<compile_context>
chip_gen: v6e
topology: v6e:2x2x1
jax: 0.10.0
libtpu: 0.0.40
codegen_flags: <defaults>
</compile_context>

<pallas_src>
import jax
import jax.numpy as jnp
from jax.experimental import pallas as pl
from jax.experimental.pallas import tpu as pltpu

# ----- small config consistent with the module -----
B = 2       # batch
S = 8       # encoder sequence length
E = 32      # encoder hidden dim (ESM2 stand-in)
LD = 16     # cfg.latent_dim
PH = 32     # cfg.pred_hidden_dim
H = 32      # cfg.dec_hidden_dim
M = 128     # cfg.max_len (power of two -> cheap per-segment position masks)
V = 24      # len(VOCAB)

HEADS = 2 * LD + 1          # packed head width: [mu | logvar | attn]
SMALL_W = 128               # lane-dense packed small-output width (>= 3*LD + 1)


def _fused_conv1d_k3(x, w, b_col, mask_m1, mask_p1):
    """PyTorch nn.Conv1d(Cin, Cout, kernel_size=3, padding=1) applied independently to B
    length-M segments laid out along lanes: x is (Cin, B*M).

    w:     (Cout, 3*Cin) packed as [w[:,:,0] | w[:,:,1] | w[:,:,2]]  (taps t-1, t, t+1)
    b_col: (Cout, 1)
    mask_m1 / mask_p1: (Cin, B*M) validity masks for the t-1 / t+1 taps (zero padding at the
    segment edges, also prevents the lane-roll from bleeding across batch segments).
    The 3 taps become a single MXU matmul on [x_{t-1}; x_t; x_{t+1}] stacked on sublanes.
    """
    x_tm1 = jnp.where(mask_m1, pltpu.roll(x, 1, axis=1), 0.0)          # x_{t-1}, zero at t=0
    x_tp1 = jnp.where(mask_p1, pltpu.roll(x, B * M - 1, axis=1), 0.0)  # x_{t+1}, zero at t=M-1
    xcat = jnp.concatenate([x_tm1, x, x_tp1], axis=0)                  # (3*Cin, B*M)
    return jnp.dot(w, xcat, preferred_element_type=jnp.float32) + b_col


def cnn_vae_kernel(enc_ref, eps_ref, head_ref, pred1_ref, pred2_ref,
                   fcw_ref, fcb_ref, c1w_ref, c2w_ref, convb_ref,
                   logits_ref, small_ref):
    # ---- fused head projection: [W_mu | W_logvar | attn_w] applied to all B*S encoder states ----
    head_w = head_ref[0:E, :]                                                 # (E, 2*LD+1)
    head_b = head_ref[E:E + 1, :]                                             # (1, 2*LD+1)
    heads = jnp.dot(enc_ref[...], head_w,
                    preferred_element_type=jnp.float32) + head_b              # (B*S, 2*LD+1)

    # ---- per-batch softmax over the sequence + attention pooling ----
    # pooling the projected heads equals projecting the pooled z_rep (affine; attn sums to 1).
    pooled_rows = []
    for b in range(B):
        hb = heads[b * S:(b + 1) * S, :]                                      # (S, 2*LD+1)
        sc = hb[:, 2 * LD:2 * LD + 1]                                         # attn logits (S, 1)
        sc = sc - jnp.max(sc, axis=0, keepdims=True)
        ew = jnp.exp(sc)
        attn = ew / jnp.sum(ew, axis=0, keepdims=True)                        # softmax over S
        pooled_rows.append(jnp.sum(attn * hb, axis=0, keepdims=True))         # (1, 2*LD+1)
    pooled = jnp.concatenate(pooled_rows, axis=0)                             # (B, 2*LD+1)

    # ---- LatentEncoder: mu / logvar heads + reparameterization ----
    mu = pooled[:, 0:LD]                                                      # (B, LD)
    logvar = pooled[:, LD:2 * LD]                                             # (B, LD)
    z = mu + jnp.exp(0.5 * logvar) * eps_ref[...]                             # (B, LD)

    # ---- DropoutPredictor on the latent (forward uses `self.predict(latent)`; eval dropout = id) ----
    ph = jnp.maximum(
        jnp.dot(z, pred1_ref[0:LD, :], preferred_element_type=jnp.float32)
        + pred1_ref[LD:LD + 1, :], 0.0)                                       # (B, PH)
    prop = (jnp.dot(ph, pred2_ref[0:PH, :], preferred_element_type=jnp.float32)
            + pred2_ref[PH:PH + 1, :])                                        # (B, 1)

    # ---- packed lane-dense small output: [mu | logvar | z | prop | 0-pad] -> one 128-wide tile ----
    small_ref[...] = jnp.zeros_like(small_ref)
    small_ref[:, 0:LD] = mu
    small_ref[:, LD:2 * LD] = logvar
    small_ref[:, 2 * LD:3 * LD] = z
    small_ref[:, 3 * LD:3 * LD + 1] = prop

    # ---- CNNDecoder: Linear(LD -> H*M) -> ReLU -> Conv1d(H,H,3,p1) -> ReLU -> Conv1d(H,V,3,p1) ----
    # The FC is a broadcast MAC over the LD latent dims so its result lands directly in the (H, M)
    # conv layout (no lane->sublane reshape); both batch halves reuse each loaded weight slice.
    fcb = fcb_ref[...]                                                        # (H, M)
    accs = [fcb for _ in range(B)]
    for l in range(LD):
        w_l = fcw_ref[l]                                                      # (H, M)
        for b in range(B):
            accs[b] = accs[b] + w_l * z[b:b + 1, l:l + 1]
    h0 = jnp.concatenate([jnp.maximum(a, 0.0) for a in accs], axis=1)         # (H, B*M)

    # shared per-position masks for both k=3 convs (both have Cin = H); M is a power of two.
    col = jax.lax.broadcasted_iota(jnp.int32, (H, B * M), 1)
    pos = jnp.bitwise_and(col, M - 1)                                         # position within segment
    mask_m1 = pos >= 1
    mask_p1 = pos <= M - 2

    c1_b = convb_ref[0:H, :]                                                  # (H, 1)
    c2_b = convb_ref[H:H + V, :]                                              # (V, 1)
    h1 = jnp.maximum(
        _fused_conv1d_k3(h0, c1w_ref[...], c1_b, mask_m1, mask_p1), 0.0)      # (H, B*M)
    logits_ref[...] = _fused_conv1d_k3(h1, c2w_ref[...], c2_b,
                                       mask_m1, mask_p1)                      # (V, B*M)


def _whole_spec(a):
    nd = a.ndim
    return pl.BlockSpec(a.shape, lambda i, _nd=nd: (0,) * _nd)


@jax.jit
def cnn_vae_forward(enc_out, eps, packed):
    """enc_out: [B,S,E] (ESM2Encoder stand-in output); eps: [B,LD] reparameterization noise.

    Returns (logits [B,V,M], pred_property [B,1], mu [B,LD], logvar [B,LD], latent [B,LD]).
    """
    enc2 = enc_out.reshape(B * S, E)
    order = ["head_wb", "pred1", "pred2", "fc_w", "fc_b", "c1_w", "c2_w", "conv_b"]
    inputs = [enc2, eps] + [packed[k] for k in order]

    out_shape = (
        jax.ShapeDtypeStruct((V, B * M), jnp.float32),     # logits, batch folded into lanes
        jax.ShapeDtypeStruct((B, SMALL_W), jnp.float32),   # packed [mu | logvar | z | prop]
    )
    logits_flat, small = pl.pallas_call(
        cnn_vae_kernel,
        out_shape=out_shape,
        grid_spec=pltpu.PrefetchScalarGridSpec(
            num_scalar_prefetch=0,
            grid=(1,),
            in_specs=[_whole_spec(x) for x in inputs],
            out_specs=(
                pl.BlockSpec((V, B * M), lambda i: (0, 0)),
                pl.BlockSpec((B, SMALL_W), lambda i: (0, 0)),
            ),
        ),
        compiler_params=pltpu.CompilerParams(dimension_semantics=("arbitrary",)),
    )(*inputs)

    logits = logits_flat.reshape(V, B, M).transpose(1, 0, 2)                  # (B, V, M)
    mu = small[:, 0:LD]
    logvar = small[:, LD:2 * LD]
    latent = small[:, 2 * LD:3 * LD]
    prop = small[:, 3 * LD:3 * LD + 1]
    return logits, prop, mu, logvar, latent


# ----------------- parameter construction (PyTorch layouts) and packing -----------------
def init_torch_style_params(key):
    """Parameters in PyTorch layouts: Linear.weight (out,in), Conv1d.weight (out,in,k)."""
    ks = jax.random.split(key, 16)
    def w(k, shape, scale=0.1):
        return (scale * jax.random.normal(k, shape)).astype(jnp.float32)
    return dict(
        attn_w=w(ks[0], (1, E)),      attn_b=w(ks[1], (1,), 0.05),
        w_mu=w(ks[2], (LD, E)),       b_mu=w(ks[3], (LD,), 0.05),
        w_lv=w(ks[4], (LD, E)),       b_lv=w(ks[5], (LD,), 0.05),
        p1_w=w(ks[6], (PH, LD)),      p1_b=w(ks[7], (PH,), 0.05),
        p2_w=w(ks[8], (1, PH)),       p2_b=w(ks[9], (1,), 0.05),
        fc_w=w(ks[10], (H * M, LD)),  fc_b=w(ks[11], (H * M,), 0.05),
        c1_w=w(ks[12], (H, H, 3)),    c1_b=w(ks[13], (H,), 0.05),
        c2_w=w(ks[14], (V, H, 3)),    c2_b=w(ks[15], (V,), 0.05),
    )


def pack_params(p):
    """Pack the PyTorch-layout parameters into the consolidated kernel layouts (plain JAX)."""
    head_w = jnp.concatenate([p["w_mu"].T, p["w_lv"].T, p["attn_w"].T], axis=1)    # (E, 2*LD+1)
    head_b = jnp.concatenate([p["b_mu"], p["b_lv"], p["attn_b"]])[None, :]         # (1, 2*LD+1)
    return dict(
        head_wb=jnp.concatenate([head_w, head_b], axis=0),                         # (E+1, 2*LD+1)
        pred1=jnp.concatenate([p["p1_w"].T, p["p1_b"][None, :]], axis=0),          # (LD+1, PH)
        pred2=jnp.concatenate([p["p2_w"].T, p["p2_b"][None, :]], axis=0),          # (PH+1, 1)
        fc_w=p["fc_w"].T.reshape(LD, H, M),                                        # (LD, H, M)
        fc_b=p["fc_b"].reshape(H, M),                                              # (H, M)
        c1_w=jnp.concatenate([p["c1_w"][:, :, k] for k in range(3)], axis=1),      # (H, 3*H)
        c2_w=jnp.concatenate([p["c2_w"][:, :, k] for k in range(3)], axis=1),      # (V, 3*H)
        conv_b=jnp.concatenate([p["c1_b"], p["c2_b"]])[:, None],                   # (H+V, 1)
    )


# ----------------- pure-JAX reference (un-fused, PyTorch semantics) -----------------
def _conv1d_ref(x, w, bias):
    # x: (B, Cin, L); w: (Cout, Cin, 3); PyTorch Conv1d(padding=1) semantics.
    length = x.shape[-1]
    xp = jnp.pad(x, ((0, 0), (0, 0), (1, 1)))
    out = bias[None, :, None]
    for k in range(3):
        out = out + jnp.einsum("bcl,oc->bol", xp[:, :, k:k + length], w[:, :, k],
                               precision=jax.lax.Precision.HIGHEST)
    return out


def reference_forward(enc_out, eps, p):
    hi = jax.lax.Precision.HIGHEST
    scores = jnp.einsum("bse,oe->bso", enc_out, p["attn_w"], precision=hi) + p["attn_b"]
    attn = jax.nn.softmax(scores, axis=1)                                          # (B, S, 1)
    z_rep = jnp.einsum("bso,bse->be", attn, enc_out, precision=hi)                 # (B, E)
    mu = jnp.dot(z_rep, p["w_mu"].T, precision=hi) + p["b_mu"]
    logvar = jnp.dot(z_rep, p["w_lv"].T, precision=hi) + p["b_lv"]
    z = mu + jnp.exp(0.5 * logvar) * eps
    ph = jax.nn.relu(jnp.dot(z, p["p1_w"].T, precision=hi) + p["p1_b"])
    prop = jnp.dot(ph, p["p2_w"].T, precision=hi) + p["p2_b"]
    h0 = jax.nn.relu((jnp.dot(z, p["fc_w"].T, precision=hi) + p["fc_b"]).reshape(B, H, M))
    h1 = jax.nn.relu(_conv1d_ref(h0, p["c1_w"], p["c1_b"]))
    logits = _conv1d_ref(h1, p["c2_w"], p["c2_b"])
    return logits, prop, mu, logvar, z


if __name__ == "__main__":
    key = jax.random.PRNGKey(0)
    k_enc, k_eps, k_par, k_ids = jax.random.split(key, 4)

    # Synthetic stand-in for ESM2Encoder(tokenize(seqs)) output and reparameterization noise.
    enc_out = jax.random.normal(k_enc, (B, S, E), jnp.float32)
    eps = jax.random.normal(k_eps, (B, LD), jnp.float32)
    torch_params = init_torch_style_params(k_par)
    packed = pack_params(torch_params)

    # Plain-JAX glue for `convert_seqs2ids` (string tokenization is outside the kernel).
    input_ids = jax.random.randint(k_ids, (B, M), 0, V)

    logits, pred_property, mu, logvar, latent = cnn_vae_forward(enc_out, eps, packed)
    jax.block_until_ready((logits, pred_property, mu, logvar, latent, input_ids))

    assert logits.shape == (B, V, M)
    assert pred_property.shape == (B, 1)
    assert mu.shape == (B, LD) and logvar.shape == (B, LD) and latent.shape == (B, LD)
    assert jnp.all(jnp.isfinite(logits)) and jnp.all(jnp.isfinite(pred_property))

    # Numerics check against the un-fused pure-JAX reference.
    r_logits, r_prop, r_mu, r_logvar, r_z = reference_forward(enc_out, eps, torch_params)
    for got, want in ((logits, r_logits), (pred_property, r_prop),
                      (mu, r_mu), (logvar, r_logvar), (latent, r_z)):
        assert jnp.allclose(got, want, rtol=2e-2, atol=2e-3), \
            float(jnp.max(jnp.abs(got - want)))

    print("KERNEL_OK")
</pallas_src>

<mosaic_0001>
module attributes {stable_mosaic.version = 11 : i64} {
  func.func @cnn_vae_kernel(%arg0: i32, %arg1: memref<16x32xf32, #tpu.memory_space<vmem>>, %arg2: memref<2x16xf32, #tpu.memory_space<vmem>>, %arg3: memref<33x33xf32, #tpu.memory_space<vmem>>, %arg4: memref<17x32xf32, #tpu.memory_space<vmem>>, %arg5: memref<33x1xf32, #tpu.memory_space<vmem>>, %arg6: memref<16x32x128xf32, #tpu.memory_space<vmem>>, %arg7: memref<32x128xf32, #tpu.memory_space<vmem>>, %arg8: memref<32x96xf32, #tpu.memory_space<vmem>>, %arg9: memref<24x96xf32, #tpu.memory_space<vmem>>, %arg10: memref<56x1xf32, #tpu.memory_space<vmem>>, %arg11: memref<24x256xf32, #tpu.memory_space<vmem>>, %arg12: memref<2x128xf32, #tpu.memory_space<vmem>>) attributes {dimension_semantics = [#tpu.dimension_semantics<arbitrary>], iteration_bounds = array<i64: 1>, scalar_prefetch = 0 : i64, scratch_operands = 0 : i64, tpu.core_type = #tpu.core_type<tc>, window_params = [{pipeline_mode = #tpu.pipeline_mode<synchronous>, transform_indices = @transform_0, window_bounds = array<i64: 16, 32>}, {pipeline_mode = #tpu.pipeline_mode<synchronous>, transform_indices = @transform_1, window_bounds = array<i64: 2, 16>}, {pipeline_mode = #tpu.pipeline_mode<synchronous>, transform_indices = @transform_2, window_bounds = array<i64: 33, 33>}, {pipeline_mode = #tpu.pipeline_mode<synchronous>, transform_indices = @transform_3, window_bounds = array<i64: 17, 32>}, {pipeline_mode = #tpu.pipeline_mode<synchronous>, transform_indices = @transform_4, window_bounds = array<i64: 33, 1>}, {pipeline_mode = #tpu.pipeline_mode<synchronous>, transform_indices = @transform_5, window_bounds = array<i64: 16, 32, 128>}, {pipeline_mode = #tpu.pipeline_mode<synchronous>, transform_indices = @transform_6, window_bounds = array<i64: 32, 128>}, {pipeline_mode = #tpu.pipeline_mode<synchronous>, transform_indices = @transform_7, window_bounds = array<i64: 32, 96>}, {pipeline_mode = #tpu.pipeline_mode<synchronous>, transform_indices = @transform_8, window_bounds = array<i64: 24, 96>}, {pipeline_mode = #tpu.pipeline_mode<synchronous>, transform_indices = @transform_9, window_bounds = array<i64: 56, 1>}, {pipeline_mode = #tpu.pipeline_mode<synchronous>, transform_indices = @transform_10, window_bounds = array<i64: 24, 256>}, {pipeline_mode = #tpu.pipeline_mode<synchronous>, transform_indices = @transform_11, window_bounds = array<i64: 2, 128>}]} {
    %c0 = arith.constant 0 : index
    %c0_0 = arith.constant 0 : index
    %0 = vector.load %arg3[%c0, %c0_0] : memref<33x33xf32, #tpu.memory_space<vmem>>, vector<32x33xf32>
    %c32 = arith.constant 32 : index
    %c0_1 = arith.constant 0 : index
    %1 = vector.load %arg3[%c32, %c0_1] : memref<33x33xf32, #tpu.memory_space<vmem>>, vector<1x33xf32>
    %c0_2 = arith.constant 0 : index
    %c0_3 = arith.constant 0 : index
    %2 = vector.load %arg1[%c0_2, %c0_3] : memref<16x32xf32, #tpu.memory_space<vmem>>, vector<16x32xf32>
    %cst = arith.constant dense<0.000000e+00> : vector<16x33xf32>
    %3 = tpu.matmul %2, %0, %cst {dimension_numbers = #tpu.dot_dimension_numbers<[1], [0], [0], [1], [0, 0, 1, 1], [], []>} : vector<16x32xf32>, vector<32x33xf32>, vector<16x33xf32> -> vector<16x33xf32>
    %4 = vector.broadcast %1 : vector<1x33xf32> to vector<16x33xf32>
    %5 = arith.addf %3, %4 : vector<16x33xf32>
    %6 = vector.extract_strided_slice %5 {offsets = [0, 0], sizes = [8, 33], strides = [1, 1]} : vector<16x33xf32> to vector<8x33xf32>
    %7 = vector.extract_strided_slice %6 {offsets = [0, 32], sizes = [8, 1], strides = [1, 1]} : vector<8x33xf32> to vector<8x1xf32>
    %cst_4 = arith.constant dense<0xFF800000> : vector<1xf32>
    %8 = vector.multi_reduction <maximumf>, %7, %cst_4 [0] : vector<8x1xf32> to vector<1xf32>
    %9 = vector.shape_cast %8 : vector<1xf32> to vector<1x1xf32>
    %10 = vector.broadcast %9 : vector<1x1xf32> to vector<8x1xf32>
    %11 = arith.subf %7, %10 : vector<8x1xf32>
    %12 = math.exp %11 : vector<8x1xf32>
    %cst_5 = arith.constant dense<0.000000e+00> : vector<1xf32>
    %13 = vector.multi_reduction <add>, %12, %cst_5 [0] : vector<8x1xf32> to vector<1xf32>
    %14 = vector.shape_cast %13 : vector<1xf32> to vector<1x1xf32>
    %15 = vector.broadcast %14 : vector<1x1xf32> to vector<8x1xf32>
    %16 = arith.divf %12, %15 : vector<8x1xf32>
    %17 = vector.broadcast %16 : vector<8x1xf32> to vector<8x33xf32>
    %18 = arith.mulf %17, %6 : vector<8x33xf32>
    %cst_6 = arith.constant dense<0.000000e+00> : vector<33xf32>
    %19 = vector.multi_reduction <add>, %18, %cst_6 [0] : vector<8x33xf32> to vector<33xf32>
    %20 = vector.shape_cast %19 : vector<33xf32> to vector<1x33xf32>
    %21 = vector.extract_strided_slice %5 {offsets = [8, 0], sizes = [8, 33], strides = [1, 1]} : vector<16x33xf32> to vector<8x33xf32>
    %22 = vector.extract_strided_slice %21 {offsets = [0, 32], sizes = [8, 1], strides = [1, 1]} : vector<8x33xf32> to vector<8x1xf32>
    %cst_7 = arith.constant dense<0xFF800000> : vector<1xf32>
    %23 = vector.multi_reduction <maximumf>, %22, %cst_7 [0] : vector<8x1xf32> to vector<1xf32>
    %24 = vector.shape_cast %23 : vector<1xf32> to vector<1x1xf32>
    %25 = vector.broadcast %24 : vector<1x1xf32> to vector<8x1xf32>
    %26 = arith.subf %22, %25 : vector<8x1xf32>
    %27 = math.exp %26 : vector<8x1xf32>
    %cst_8 = arith.constant dense<0.000000e+00> : vector<1xf32>
    %28 = vector.multi_reduction <add>, %27, %cst_8 [0] : vector<8x1xf32> to vector<1xf32>
    %29 = vector.shape_cast %28 : vector<1xf32> to vector<1x1xf32>
    %30 = vector.broadcast %29 : vector<1x1xf32> to vector<8x1xf32>
    %31 = arith.divf %27, %30 : vector<8x1xf32>
    %32 = vector.broadcast %31 : vector<8x1xf32> to vector<8x33xf32>
    %33 = arith.mulf %32, %21 : vector<8x33xf32>
    %cst_9 = arith.constant dense<0.000000e+00> : vector<33xf32>
    %34 = vector.multi_reduction <add>, %33, %cst_9 [0] : vector<8x33xf32> to vector<33xf32>
    %35 = vector.shape_cast %34 : vector<33xf32> to vector<1x33xf32>
    %36 = tpu.concatenate %20, %35 in 0 : vector<1x33xf32>, vector<1x33xf32> -> vector<2x33xf32>
    %37 = vector.extract_strided_slice %36 {offsets = [0, 0], sizes = [2, 16], strides = [1, 1]} : vector<2x33xf32> to vector<2x16xf32>
    %38 = vector.extract_strided_slice %36 {offsets = [0, 16], sizes = [2, 16], strides = [1, 1]} : vector<2x33xf32> to vector<2x16xf32>
    %cst_10 = arith.constant 5.000000e-01 : f32
    %39 = vector.broadcast %cst_10 : f32 to vector<2x16xf32>
    %40 = arith.mulf %39, %38 : vector<2x16xf32>
    %41 = math.exp %40 : vector<2x16xf32>
    %c0_11 = arith.constant 0 : index
    %c0_12 = arith.constant 0 : index
    %42 = vector.load %arg2[%c0_11, %c0_12] : memref<2x16xf32, #tpu.memory_space<vmem>>, vector<2x16xf32>
    %43 = arith.mulf %41, %42 : vector<2x16xf32>
    %44 = arith.addf %37, %43 : vector<2x16xf32>
    %c0_13 = arith.constant 0 : index
    %c0_14 = arith.constant 0 : index
    %45 = vector.load %arg4[%c0_13, %c0_14] : memref<17x32xf32, #tpu.memory_space<vmem>>, vector<16x32xf32>
    %cst_15 = arith.constant dense<0.000000e+00> : vector<2x32xf32>
    %46 = tpu.matmul %44, %45, %cst_15 {dimension_numbers = #tpu.dot_dimension_numbers<[1], [0], [0], [1], [0, 0, 1, 1], [], []>} : vector<2x16xf32>, vector<16x32xf32>, vector<2x32xf32> -> vector<2x32xf32>
    %c16 = arith.constant 16 : index
    %c0_16 = arith.constant 0 : index
    %47 = vector.load %arg4[%c16, %c0_16] : memref<17x32xf32, #tpu.memory_space<vmem>>, vector<1x32xf32>
    %48 = vector.broadcast %47 : vector<1x32xf32> to vector<2x32xf32>
    %49 = arith.addf %46, %48 : vector<2x32xf32>
    %cst_17 = arith.constant 0.000000e+00 : f32
    %50 = vector.broadcast %cst_17 : f32 to vector<2x32xf32>
    %51 = arith.maximumf %49, %50 : vector<2x32xf32>
    %c0_18 = arith.constant 0 : index
    %c0_19 = arith.constant 0 : index
    %52 = vector.load %arg5[%c0_18, %c0_19] : memref<33x1xf32, #tpu.memory_space<vmem>>, vector<32x1xf32>
    %cst_20 = arith.constant dense<0.000000e+00> : vector<2x1xf32>
    %53 = tpu.matmul %51, %52, %cst_20 {dimension_numbers = #tpu.dot_dimension_numbers<[1], [0], [0], [1], [0, 0, 1, 1], [], []>} : vector<2x32xf32>, vector<32x1xf32>, vector<2x1xf32> -> vector<2x1xf32>
    %c32_21 = arith.constant 32 : index
    %c0_22 = arith.constant 0 : index
    %54 = vector.load %arg5[%c32_21, %c0_22] : memref<33x1xf32, #tpu.memory_space<vmem>>, vector<1x1xf32>
    %55 = vector.broadcast %54 : vector<1x1xf32> to vector<2x1xf32>
    %56 = arith.addf %53, %55 : vector<2x1xf32>
    %cst_23 = arith.constant 0.000000e+00 : f32
    %57 = vector.broadcast %cst_23 : f32 to vector<2x128xf32>
    %c0_24 = arith.constant 0 : index
    %c0_25 = arith.constant 0 : index
    %58 = vector.load %arg12[%c0_24, %c0_25] : memref<2x128xf32, #tpu.memory_space<vmem>>, vector<2x128xf32>
    tpu.vector_store %arg12[%c0_24, %c0_25], %57 {strides = array<i32>} : memref<2x128xf32, #tpu.memory_space<vmem>>, vector<2x128xf32>,
    %c0_26 = arith.constant 0 : index
    %c0_27 = arith.constant 0 : index
    %59 = vector.load %arg12[%c0_26, %c0_27] : memref<2x128xf32, #tpu.memory_space<vmem>>, vector<2x16xf32>
    tpu.vector_store %arg12[%c0_26, %c0_27], %37 {strides = array<i32>} : memref<2x128xf32, #tpu.memory_space<vmem>>, vector<2x16xf32>,
    %c0_28 = arith.constant 0 : index
    %c16_29 = arith.constant 16 : index
    %60 = vector.load %arg12[%c0_28, %c16_29] : memref<2x128xf32, #tpu.memory_space<vmem>>, vector<2x16xf32>
    tpu.vector_store %arg12[%c0_28, %c16_29], %38 {strides = array<i32>} : memref<2x128xf32, #tpu.memory_space<vmem>>, vector<2x16xf32>,
    %c0_30 = arith.constant 0 : index
    %c32_31 = arith.constant 32 : index
    %61 = vector.load %arg12[%c0_30, %c32_31] : memref<2x128xf32, #tpu.memory_space<vmem>>, vector<2x16xf32>
    tpu.vector_store %arg12[%c0_30, %c32_31], %44 {strides = array<i32>} : memref<2x128xf32, #tpu.memory_space<vmem>>, vector<2x16xf32>,
    %c0_32 = arith.constant 0 : index
    %c48 = arith.constant 48 : index
    %62 = vector.load %arg12[%c0_32, %c48] : memref<2x128xf32, #tpu.memory_space<vmem>>, vector<2x1xf32>
    tpu.vector_store %arg12[%c0_32, %c48], %56 {strides = array<i32>} : memref<2x128xf32, #tpu.memory_space<vmem>>, vector<2x1xf32>,
    %c0_33 = arith.constant 0 : index
    %c0_34 = arith.constant 0 : index
    %63 = vector.load %arg7[%c0_33, %c0_34] : memref<32x128xf32, #tpu.memory_space<vmem>>, vector<32x128xf32>
    %c0_35 = arith.constant 0 : index
    %c0_36 = arith.constant 0 : index
    %c0_37 = arith.constant 0 : index
    %64 = vector.load %arg6[%c0_35, %c0_36, %c0_37] : memref<16x32x128xf32, #tpu.memory_space<vmem>>, vector<1x32x128xf32>
    %65 = vector.shape_cast %64 : vector<1x32x128xf32> to vector<32x128xf32>
    %66 = vector.extract_strided_slice %44 {offsets = [0, 0], sizes = [1, 1], strides = [1, 1]} : vector<2x16xf32> to vector<1x1xf32>
    %67 = vector.broadcast %66 : vector<1x1xf32> to vector<32x128xf32>
    %68 = arith.mulf %65, %67 : vector<32x128xf32>
    %69 = arith.addf %63, %68 : vector<32x128xf32>
    %70 = vector.extract_strided_slice %44 {offsets = [1, 0], sizes = [1, 1], strides = [1, 1]} : vector<2x16xf32> to vector<1x1xf32>
    %71 = vector.broadcast %70 : vector<1x1xf32> to vector<32x128xf32>
    %72 = arith.mulf %65, %71 : vector<32x128xf32>
    %73 = arith.addf %63, %72 : vector<32x128xf32>
    %c1 = arith.constant 1 : index
    %c0_38 = arith.constant 0 : index
    %c0_39 = arith.constant 0 : index
    %74 = vector.load %arg6[%c1, %c0_38, %c0_39] : memref<16x32x128xf32, #tpu.memory_space<vmem>>, vector<1x32x128xf32>
    %75 = vector.shape_cast %74 : vector<1x32x128xf32> to vector<32x128xf32>
    %76 = vector.extract_strided_slice %44 {offsets = [0, 1], sizes = [1, 1], strides = [1, 1]} : vector<2x16xf32> to vector<1x1xf32>
    %77 = vector.broadcast %76 : vector<1x1xf32> to vector<32x128xf32>
    %78 = arith.mulf %75, %77 : vector<32x128xf32>
    %79 = arith.addf %69, %78 : vector<32x128xf32>
    %80 = vector.extract_strided_slice %44 {offsets = [1, 1], sizes = [1, 1], strides = [1, 1]} : vector<2x16xf32> to vector<1x1xf32>
    %81 = vector.broadcast %80 : vector<1x1xf32> to vector<32x128xf32>
    %82 = arith.mulf %75, %81 : vector<32x128xf32>
    %83 = arith.addf %73, %82 : vector<32x128xf32>
    %c2 = arith.constant 2 : index
    %c0_40 = arith.constant 0 : index
    %c0_41 = arith.constant 0 : index
    %84 = vector.load %arg6[%c2, %c0_40, %c0_41] : memref<16x32x128xf32, #tpu.memory_space<vmem>>, vector<1x32x128xf32>
    %85 = vector.shape_cast %84 : vector<1x32x128xf32> to vector<32x128xf32>
    %86 = vector.extract_strided_slice %44 {offsets = [0, 2], sizes = [1, 1], strides = [1, 1]} : vector<2x16xf32> to vector<1x1xf32>
    %87 = vector.broadcast %86 : vector<1x1xf32> to vector<32x128xf32>
    %88 = arith.mulf %85, %87 : vector<32x128xf32>
    %89 = arith.addf %79, %88 : vector<32x128xf32>
    %90 = vector.extract_strided_slice %44 {offsets = [1, 2], sizes = [1, 1], strides = [1, 1]} : vector<2x16xf32> to vector<1x1xf32>
    %91 = vector.broadcast %90 : vector<1x1xf32> to vector<32x128xf32>
    %92 = arith.mulf %85, %91 : vector<32x128xf32>
    %93 = arith.addf %83, %92 : vector<32x128xf32>
    %c3 = arith.constant 3 : index
    %c0_42 = arith.constant 0 : index
    %c0_43 = arith.constant 0 : index
    %94 = vector.load %arg6[%c3, %c0_42, %c0_43] : memref<16x32x128xf32, #tpu.memory_space<vmem>>, vector<1x32x128xf32>
    %95 = vector.shape_cast %94 : vector<1x32x128xf32> to vector<32x128xf32>
    %96 = vector.extract_strided_slice %44 {offsets = [0, 3], sizes = [1, 1], strides = [1, 1]} : vector<2x16xf32> to vector<1x1xf32>
    %97 = vector.broadcast %96 : vector<1x1xf32> to vector<32x128xf32>
    %98 = arith.mulf %95, %97 : vector<32x128xf32>
    %99 = arith.addf %89, %98 : vector<32x128xf32>
    %100 = vector.extract_strided_slice %44 {offsets = [1, 3], sizes = [1, 1], strides = [1, 1]} : vector<2x16xf32> to vector<1x1xf32>
    %101 = vector.broadcast %100 : vector<1x1xf32> to vector<32x128xf32>
    %102 = arith.mulf %95, %101 : vector<32x128xf32>
    %103 = arith.addf %93, %102 : vector<32x128xf32>
    %c4 = arith.constant 4 : index
    %c0_44 = arith.constant 0 : index
    %c0_45 = arith.constant 0 : index
    %104 = vector.load %arg6[%c4, %c0_44, %c0_45] : memref<16x32x128xf32, #tpu.memory_space<vmem>>, vector<1x32x128xf32>
    %105 = vector.shape_cast %104 : vector<1x32x128xf32> to vector<32x128xf32>
    %106 = vector.extract_strided_slice %44 {offsets = [0, 4], sizes = [1, 1], strides = [1, 1]} : vector<2x16xf32> to vector<1x1xf32>
    %107 = vector.broadcast %106 : vector<1x1xf32> to vector<32x128xf32>
    %108 = arith.mulf %105, %107 : vector<32x128xf32>
    %109 = arith.addf %99, %108 : vector<32x128xf32>
    %110 = vector.extract_strided_slice %44 {offsets = [1, 4], sizes = [1, 1], strides = [1, 1]} : vector<2x16xf32> to vector<1x1xf32>
    %111 = vector.broadcast %110 : vector<1x1xf32> to vector<32x128xf32>
    %112 = arith.mulf %105, %111 : vector<32x128xf32>
    %113 = arith.addf %103, %112 : vector<32x128xf32>
    %c5 = arith.constant 5 : index
    %c0_46 = arith.constant 0 : index
    %c0_47 = arith.constant 0 : index
    %114 = vector.load %arg6[%c5, %c0_46, %c0_47] : memref<16x32x128xf32, #tpu.memory_space<vmem>>, vector<1x32x128xf32>
    %115 = vector.shape_cast %114 : vector<1x32x128xf32> to vector<32x128xf32>
    %116 = vector.extract_strided_slice %44 {offsets = [0, 5], sizes = [1, 1], strides = [1, 1]} : vector<2x16xf32> to vector<1x1xf32>
    %117 = vector.broadcast %116 : vector<1x1xf32> to vector<32x128xf32>
    %118 = arith.mulf %115, %117 : vector<32x128xf32>
    %119 = arith.addf %109, %118 : vector<32x128xf32>
    %120 = vector.extract_strided_slice %44 {offsets = [1, 5], sizes = [1, 1], strides = [1, 1]} : vector<2x16xf32> to vector<1x1xf32>
    %121 = vector.broadcast %120 : vector<1x1xf32> to vector<32x128xf32>
    %122 = arith.mulf %115, %121 : vector<32x128xf32>
    %123 = arith.addf %113, %122 : vector<32x128xf32>
    %c6 = arith.constant 6 : index
    %c0_48 = arith.constant 0 : index
    %c0_49 = arith.constant 0 : index
    %124 = vector.load %arg6[%c6, %c0_48, %c0_49] : memref<16x32x128xf32, #tpu.memory_space<vmem>>, vector<1x32x128xf32>
    %125 = vector.shape_cast %124 : vector<1x32x128xf32> to vector<32x128xf32>
    %126 = vector.extract_strided_slice %44 {offsets = [0, 6], sizes = [1, 1], strides = [1, 1]} : vector<2x16xf32> to vector<1x1xf32>
    %127 = vector.broadcast %126 : vector<1x1xf32> to vector<32x128xf32>
    %128 = arith.mulf %125, %127 : vector<32x128xf32>
    %129 = arith.addf %119, %128 : vector<32x128xf32>
    %130 = vector.extract_strided_slice %44 {offsets = [1, 6], sizes = [1, 1], strides = [1, 1]} : vector<2x16xf32> to vector<1x1xf32>
    %131 = vector.broadcast %130 : vector<1x1xf32> to vector<32x128xf32>
    %132 = arith.mulf %125, %131 : vector<32x128xf32>
    %133 = arith.addf %123, %132 : vector<32x128xf32>
    %c7 = arith.constant 7 : index
    %c0_50 = arith.constant 0 : index
    %c0_51 = arith.constant 0 : index
    %134 = vector.load %arg6[%c7, %c0_50, %c0_51] : memref<16x32x128xf32, #tpu.memory_space<vmem>>, vector<1x32x128xf32>
    %135 = vector.shape_cast %134 : vector<1x32x128xf32> to vector<32x128xf32>
    %136 = vector.extract_strided_slice %44 {offsets = [0, 7], sizes = [1, 1], strides = [1, 1]} : vector<2x16xf32> to vector<1x1xf32>
    %137 = vector.broadcast %136 : vector<1x1xf32> to vector<32x128xf32>
    %138 = arith.mulf %135, %137 : vector<32x128xf32>
    %139 = arith.addf %129, %138 : vector<32x128xf32>
    %140 = vector.extract_strided_slice %44 {offsets = [1, 7], sizes = [1, 1], strides = [1, 1]} : vector<2x16xf32> to vector<1x1xf32>
    %141 = vector.broadcast %140 : vector<1x1xf32> to vector<32x128xf32>
    %142 = arith.mulf %135, %141 : vector<32x128xf32>
    %143 = arith.addf %133, %142 : vector<32x128xf32>
    %c8 = arith.constant 8 : index
    %c0_52 = arith.constant 0 : index
    %c0_53 = arith.constant 0 : index
    %144 = vector.load %arg6[%c8, %c0_52, %c0_53] : memref<16x32x128xf32, #tpu.memory_space<vmem>>, vector<1x32x128xf32>
    %145 = vector.shape_cast %144 : vector<1x32x128xf32> to vector<32x128xf32>
    %146 = vector.extract_strided_slice %44 {offsets = [0, 8], sizes = [1, 1], strides = [1, 1]} : vector<2x16xf32> to vector<1x1xf32>
    %147 = vector.broadcast %146 : vector<1x1xf32> to vector<32x128xf32>
    %148 = arith.mulf %145, %147 : vector<32x128xf32>
    %149 = arith.addf %139, %148 : vector<32x128xf32>
    %150 = vector.extract_strided_slice %44 {offsets = [1, 8], sizes = [1, 1], strides = [1, 1]} : vector<2x16xf32> to vector<1x1xf32>
    %151 = vector.broadcast %150 : vector<1x1xf32> to vector<32x128xf32>
    %152 = arith.mulf %145, %151 : vector<32x128xf32>
    %153 = arith.addf %143, %152 : vector<32x128xf32>
    %c9 = arith.constant 9 : index
    %c0_54 = arith.constant 0 : index
    %c0_55 = arith.constant 0 : index
    %154 = vector.load %arg6[%c9, %c0_54, %c0_55] : memref<16x32x128xf32, #tpu.memory_space<vmem>>, vector<1x32x128xf32>
    %155 = vector.shape_cast %154 : vector<1x32x128xf32> to vector<32x128xf32>
    %156 = vector.extract_strided_slice %44 {offsets = [0, 9], sizes = [1, 1], strides = [1, 1]} : vector<2x16xf32> to vector<1x1xf32>
    %157 = vector.broadcast %156 : vector<1x1xf32> to vector<32x128xf32>
    %158 = arith.mulf %155, %157 : vector<32x128xf32>
    %159 = arith.addf %149, %158 : vector<32x128xf32>
    %160 = vector.extract_strided_slice %44 {offsets = [1, 9], sizes = [1, 1], strides = [1, 1]} : vector<2x16xf32> to vector<1x1xf32>
    %161 = vector.broadcast %160 : vector<1x1xf32> to vector<32x128xf32>
    %162 = arith.mulf %155, %161 : vector<32x128xf32>
    %163 = arith.addf %153, %162 : vector<32x128xf32>
    %c10 = arith.constant 10 : index
    %c0_56 = arith.constant 0 : index
    %c0_57 = arith.constant 0 : index
    %164 = vector.load %arg6[%c10, %c0_56, %c0_57] : memref<16x32x128xf32, #tpu.memory_space<vmem>>, vector<1x32x128xf32>
    %165 = vector.shape_cast %164 : vector<1x32x128xf32> to vector<32x128xf32>
    %166 = vector.extract_strided_slice %44 {offsets = [0, 10], sizes = [1, 1], strides = [1, 1]} : vector<2x16xf32> to vector<1x1xf32>
    %167 = vector.broadcast %166 : vector<1x1xf32> to vector<32x128xf32>
    %168 = arith.mulf %165, %167 : vector<32x128xf32>
    %169 = arith.addf %159, %168 : vector<32x128xf32>
    %170 = vector.extract_strided_slice %44 {offsets = [1, 10], sizes = [1, 1], strides = [1, 1]} : vector<2x16xf32> to vector<1x1xf32>
    %171 = vector.broadcast %170 : vector<1x1xf32> to vector<32x128xf32>
    %172 = arith.mulf %165, %171 : vector<32x128xf32>
    %173 = arith.addf %163, %172 : vector<32x128xf32>
    %c11 = arith.constant 11 : index
    %c0_58 = arith.constant 0 : index
    %c0_59 = arith.constant 0 : index
    %174 = vector.load %arg6[%c11, %c0_58, %c0_59] : memref<16x32x128xf32, #tpu.memory_space<vmem>>, vector<1x32x128xf32>
    %175 = vector.shape_cast %174 : vector<1x32x128xf32> to vector<32x128xf32>
    %176 = vector.extract_strided_slice %44 {offsets = [0, 11], sizes = [1, 1], strides = [1, 1]} : vector<2x16xf32> to vector<1x1xf32>
    %177 = vector.broadcast %176 : vector<1x1xf32> to vector<32x128xf32>
    %178 = arith.mulf %175, %177 : vector<32x128xf32>
    %179 = arith.addf %169, %178 : vector<32x128xf32>
    %180 = vector.extract_strided_slice %44 {offsets = [1, 11], sizes = [1, 1], strides = [1, 1]} : vector<2x16xf32> to vector<1x1xf32>
    %181 = vector.broadcast %180 : vector<1x1xf32> to vector<32x128xf32>
    %182 = arith.mulf %175, %181 : vector<32x128xf32>
    %183 = arith.addf %173, %182 : vector<32x128xf32>
    %c12 = arith.constant 12 : index
    %c0_60 = arith.constant 0 : index
    %c0_61 = arith.constant 0 : index
    %184 = vector.load %arg6[%c12, %c0_60, %c0_61] : memref<16x32x128xf32, #tpu.memory_space<vmem>>, vector<1x32x128xf32>
    %185 = vector.shape_cast %184 : vector<1x32x128xf32> to vector<32x128xf32>
    %186 = vector.extract_strided_slice %44 {offsets = [0, 12], sizes = [1, 1], strides = [1, 1]} : vector<2x16xf32> to vector<1x1xf32>
    %187 = vector.broadcast %186 : vector<1x1xf32> to vector<32x128xf32>
    %188 = arith.mulf %185, %187 : vector<32x128xf32>
    %189 = arith.addf %179, %188 : vector<32x128xf32>
    %190 = vector.extract_strided_slice %44 {offsets = [1, 12], sizes = [1, 1], strides = [1, 1]} : vector<2x16xf32> to vector<1x1xf32>
    %191 = vector.broadcast %190 : vector<1x1xf32> to vector<32x128xf32>
    %192 = arith.mulf %185, %191 : vector<32x128xf32>
    %193 = arith.addf %183, %192 : vector<32x128xf32>
    %c13 = arith.constant 13 : index
    %c0_62 = arith.constant 0 : index
    %c0_63 = arith.constant 0 : index
    %194 = vector.load %arg6[%c13, %c0_62, %c0_63] : memref<16x32x128xf32, #tpu.memory_space<vmem>>, vector<1x32x128xf32>
    %195 = vector.shape_cast %194 : vector<1x32x128xf32> to vector<32x128xf32>
    %196 = vector.extract_strided_slice %44 {offsets = [0, 13], sizes = [1, 1], strides = [1, 1]} : vector<2x16xf32> to vector<1x1xf32>
    %197 = vector.broadcast %196 : vector<1x1xf32> to vector<32x128xf32>
    %198 = arith.mulf %195, %197 : vector<32x128xf32>
    %199 = arith.addf %189, %198 : vector<32x128xf32>
    %200 = vector.extract_strided_slice %44 {offsets = [1, 13], sizes = [1, 1], strides = [1, 1]} : vector<2x16xf32> to vector<1x1xf32>
    %201 = vector.broadcast %200 : vector<1x1xf32> to vector<32x128xf32>
    %202 = arith.mulf %195, %201 : vector<32x128xf32>
    %203 = arith.addf %193, %202 : vector<32x128xf32>
    %c14 = arith.constant 14 : index
    %c0_64 = arith.constant 0 : index
    %c0_65 = arith.constant 0 : index
    %204 = vector.load %arg6[%c14, %c0_64, %c0_65] : memref<16x32x128xf32, #tpu.memory_space<vmem>>, vector<1x32x128xf32>
    %205 = vector.shape_cast %204 : vector<1x32x128xf32> to vector<32x128xf32>
    %206 = vector.extract_strided_slice %44 {offsets = [0, 14], sizes = [1, 1], strides = [1, 1]} : vector<2x16xf32> to vector<1x1xf32>
    %207 = vector.broadcast %206 : vector<1x1xf32> to vector<32x128xf32>
    %208 = arith.mulf %205, %207 : vector<32x128xf32>
    %209 = arith.addf %199, %208 : vector<32x128xf32>
    %210 = vector.extract_strided_slice %44 {offsets = [1, 14], sizes = [1, 1], strides = [1, 1]} : vector<2x16xf32> to vector<1x1xf32>
    %211 = vector.broadcast %210 : vector<1x1xf32> to vector<32x128xf32>
    %212 = arith.mulf %205, %211 : vector<32x128xf32>
    %213 = arith.addf %203, %212 : vector<32x128xf32>
    %c15 = arith.constant 15 : index
    %c0_66 = arith.constant 0 : index
    %c0_67 = arith.constant 0 : index
    %214 = vector.load %arg6[%c15, %c0_66, %c0_67] : memref<16x32x128xf32, #tpu.memory_space<vmem>>, vector<1x32x128xf32>
    %215 = vector.shape_cast %214 : vector<1x32x128xf32> to vector<32x128xf32>
    %216 = vector.extract_strided_slice %44 {offsets = [0, 15], sizes = [1, 1], strides = [1, 1]} : vector<2x16xf32> to vector<1x1xf32>
    %217 = vector.broadcast %216 : vector<1x1xf32> to vector<32x128xf32>
    %218 = arith.mulf %215, %217 : vector<32x128xf32>
    %219 = arith.addf %209, %218 : vector<32x128xf32>
    %220 = vector.extract_strided_slice %44 {offsets = [1, 15], sizes = [1, 1], strides = [1, 1]} : vector<2x16xf32> to vector<1x1xf32>
    %221 = vector.broadcast %220 : vector<1x1xf32> to vector<32x128xf32>
    %222 = arith.mulf %215, %221 : vector<32x128xf32>
    %223 = arith.addf %213, %222 : vector<32x128xf32>
    %cst_68 = arith.constant 0.000000e+00 : f32
    %224 = vector.broadcast %cst_68 : f32 to vector<32x128xf32>
    %225 = arith.maximumf %219, %224 : vector<32x128xf32>
    %cst_69 = arith.constant 0.000000e+00 : f32
    %226 = vector.broadcast %cst_69 : f32 to vector<32x128xf32>
    %227 = arith.maximumf %223, %226 : vector<32x128xf32>
    %228 = tpu.concatenate %225, %227 in 1 : vector<32x128xf32>, vector<32x128xf32> -> vector<32x256xf32>
    %229 = tpu.iota {dimensions = array<i32: 1>} : vector<32x256xi32>
    %c127_i32 = arith.constant 127 : i32
    %230 = vector.broadcast %c127_i32 : i32 to vector<32x256xi32>
    %231 = arith.andi %229, %230 : vector<32x256xi32>
    %c1_i32 = arith.constant 1 : i32
    %232 = vector.broadcast %c1_i32 : i32 to vector<32x256xi32>
    %233 = arith.cmpi sge, %231, %232 : vector<32x256xi32>
    %c126_i32 = arith.constant 126 : i32
    %234 = vector.broadcast %c126_i32 : i32 to vector<32x256xi32>
    %235 = arith.cmpi sle, %231, %234 : vector<32x256xi32>
    %c0_70 = arith.constant 0 : index
    %c0_71 = arith.constant 0 : index
    %236 = vector.load %arg10[%c0_70, %c0_71] : memref<56x1xf32, #tpu.memory_space<vmem>>, vector<32x1xf32>
    %c32_72 = arith.constant 32 : index
    %c0_73 = arith.constant 0 : index
    %237 = vector.load %arg10[%c32_72, %c0_73] : memref<56x1xf32, #tpu.memory_space<vmem>>, vector<24x1xf32>
    %c0_74 = arith.constant 0 : index
    %c0_75 = arith.constant 0 : index
    %238 = vector.load %arg8[%c0_74, %c0_75] : memref<32x96xf32, #tpu.memory_space<vmem>>, vector<32x96xf32>
    %c1_i32_76 = arith.constant 1 : i32
    %239 = tpu.dynamic_rotate %228 by %c1_i32_76 dim 1 : vector<32x256xf32>, i32 -> vector<32x256xf32>
    %cst_77 = arith.constant 0.000000e+00 : f32
    %240 = vector.broadcast %cst_77 : f32 to vector<32x256xf32>
    %241 = arith.select %233, %239, %240 : vector<32x256xi1>, vector<32x256xf32>
    %c255_i32 = arith.constant 255 : i32
    %242 = tpu.dynamic_rotate %228 by %c255_i32 dim 1 : vector<32x256xf32>, i32 -> vector<32x256xf32>
    %cst_78 = arith.constant 0.000000e+00 : f32
    %243 = vector.broadcast %cst_78 : f32 to vector<32x256xf32>
    %244 = arith.select %235, %242, %243 : vector<32x256xi1>, vector<32x256xf32>
    %245 = tpu.concatenate %241, %228, %244 in 0 : vector<32x256xf32>, vector<32x256xf32>, vector<32x256xf32> -> vector<96x256xf32>
    %cst_79 = arith.constant dense<0.000000e+00> : vector<32x256xf32>
    %246 = tpu.matmul %238, %245, %cst_79 {dimension_numbers = #tpu.dot_dimension_numbers<[1], [0], [0], [1], [0, 0, 1, 1], [], []>} : vector<32x96xf32>, vector<96x256xf32>, vector<32x256xf32> -> vector<32x256xf32>
    %247 = vector.broadcast %236 : vector<32x1xf32> to vector<32x256xf32>
    %248 = arith.addf %246, %247 : vector<32x256xf32>
    %cst_80 = arith.constant 0.000000e+00 : f32
    %249 = vector.broadcast %cst_80 : f32 to vector<32x256xf32>
    %250 = arith.maximumf %248, %249 : vector<32x256xf32>
    %c0_81 = arith.constant 0 : index
    %c0_82 = arith.constant 0 : index
    %251 = vector.load %arg9[%c0_81, %c0_82] : memref<24x96xf32, #tpu.memory_space<vmem>>, vector<24x96xf32>
    %c1_i32_83 = arith.constant 1 : i32
    %252 = tpu.dynamic_rotate %250 by %c1_i32_83 dim 1 : vector<32x256xf32>, i32 -> vector<32x256xf32>
    %cst_84 = arith.constant 0.000000e+00 : f32
    %253 = vector.broadcast %cst_84 : f32 to vector<32x256xf32>
    %254 = arith.select %233, %252, %253 : vector<32x256xi1>, vector<32x256xf32>
    %c255_i32_85 = arith.constant 255 : i32
    %255 = tpu.dynamic_rotate %250 by %c255_i32_85 dim 1 : vector<32x256xf32>, i32 -> vector<32x256xf32>
    %cst_86 = arith.constant 0.000000e+00 : f32
    %256 = vector.broadcast %cst_86 : f32 to vector<32x256xf32>
    %257 = arith.select %235, %255, %256 : vector<32x256xi1>, vector<32x256xf32>
    %258 = tpu.concatenate %254, %250, %257 in 0 : vector<32x256xf32>, vector<32x256xf32>, vector<32x256xf32> -> vector<96x256xf32>
    %cst_87 = arith.constant dense<0.000000e+00> : vector<24x256xf32>
    %259 = tpu.matmul %251, %258, %cst_87 {dimension_numbers = #tpu.dot_dimension_numbers<[1], [0], [0], [1], [0, 0, 1, 1], [], []>} : vector<24x96xf32>, vector<96x256xf32>, vector<24x256xf32> -> vector<24x256xf32>
    %260 = vector.broadcast %237 : vector<24x1xf32> to vector<24x256xf32>
    %261 = arith.addf %259, %260 : vector<24x256xf32>
    %c0_88 = arith.constant 0 : index
    %c0_89 = arith.constant 0 : index
    %262 = vector.load %arg11[%c0_88, %c0_89] : memref<24x256xf32, #tpu.memory_space<vmem>>, vector<24x256xf32>
    tpu.vector_store %arg11[%c0_88, %c0_89], %261 {strides = array<i32>} : memref<24x256xf32, #tpu.memory_space<vmem>>, vector<24x256xf32>,
    return
  }
  func.func @transform_0(%arg0: i32) -> (i32, i32) {
    %c0_i32 = arith.constant 0 : i32
    %c0_i32_0 = arith.constant 0 : i32
    %c0_i32_1 = arith.constant 0 : i32
    return %c0_i32, %c0_i32_0 : i32, i32
  }
  func.func @transform_1(%arg0: i32) -> (i32, i32) {
    %c0_i32 = arith.constant 0 : i32
    %c0_i32_0 = arith.constant 0 : i32
    %c0_i32_1 = arith.constant 0 : i32
    return %c0_i32, %c0_i32_0 : i32, i32
  }
  func.func @transform_2(%arg0: i32) -> (i32, i32) {
    %c0_i32 = arith.constant 0 : i32
    %c0_i32_0 = arith.constant 0 : i32
    %c0_i32_1 = arith.constant 0 : i32
    return %c0_i32, %c0_i32_0 : i32, i32
  }
  func.func @transform_3(%arg0: i32) -> (i32, i32) {
    %c0_i32 = arith.constant 0 : i32
    %c0_i32_0 = arith.constant 0 : i32
    %c0_i32_1 = arith.constant 0 : i32
    return %c0_i32, %c0_i32_0 : i32, i32
  }
  func.func @transform_4(%arg0: i32) -> (i32, i32) {
    %c0_i32 = arith.constant 0 : i32
    %c0_i32_0 = arith.constant 0 : i32
    %c0_i32_1 = arith.constant 0 : i32
    return %c0_i32, %c0_i32_0 : i32, i32
  }
  func.func @transform_5(%arg0: i32) -> (i32, i32, i32) {
    %c0_i32 = arith.constant 0 : i32
    %c0_i32_0 = arith.constant 0 : i32
    %c0_i32_1 = arith.constant 0 : i32
    %c0_i32_2 = arith.constant 0 : i32
    return %c0_i32, %c0_i32_0, %c0_i32_1 : i32, i32, i32
  }
  func.func @transform_6(%arg0: i32) -> (i32, i32) {
    %c0_i32 = arith.constant 0 : i32
    %c0_i32_0 = arith.constant 0 : i32
    %c0_i32_1 = arith.constant 0 : i32
    return %c0_i32, %c0_i32_0 : i32, i32
  }
  func.func @transform_7(%arg0: i32) -> (i32, i32) {
    %c0_i32 = arith.constant 0 : i32
    %c0_i32_0 = arith.constant 0 : i32
    %c0_i32_1 = arith.constant 0 : i32
    return %c0_i32, %c0_i32_0 : i32, i32
  }
  func.func @transform_8(%arg0: i32) -> (i32, i32) {
    %c0_i32 = arith.constant 0 : i32
    %c0_i32_0 = arith.constant 0 : i32
    %c0_i32_1 = arith.constant 0 : i32
    return %c0_i32, %c0_i32_0 : i32, i32
  }
  func.func @transform_9(%arg0: i32) -> (i32, i32) {
    %c0_i32 = arith.constant 0 : i32
    %c0_i32_0 = arith.constant 0 : i32
    %c0_i32_1 = arith.constant 0 : i32
    return %c0_i32, %c0_i32_0 : i32, i32
  }
  func.func @transform_10(%arg0: i32) -> (i32, i32) {
    %c0_i32 = arith.constant 0 : i32
    %c0_i32_0 = arith.constant 0 : i32
    %c0_i32_1 = arith.constant 0 : i32
    return %c0_i32, %c0_i32_0 : i32, i32
  }
  func.func @transform_11(%arg0: i32) -> (i32, i32) {
    %c0_i32 = arith.constant 0 : i32
    %c0_i32_0 = arith.constant 0 : i32
    %c0_i32_1 = arith.constant 0 : i32
    return %c0_i32, %c0_i32_0 : i32, i32
  }
}

</mosaic_0001>

<bundles_post_ra>
// kernel: cnn_vae_forward.1
= control target key start
LH: loop header
LB: loop body
LE: loop exit
PB: predicated region body
PF: predicated region fallthrough
CT: control target
= control target key end

     0   :  { %17 = vsyncpa [#allocation3], 0  ;;  %s2158_s0 = inlined_call_operand.hbm [shape: f32[16,32], index: 0, kind: input, shape index: {}]   ;;  %s2159_s1 = inlined_call_operand.vmem [shape: f32[2,16], index: 1, kind: input, shape index: {}]   ;;  %s2160_s2 = inlined_call_operand.vmem [shape: f32[33,33], index: 2, kind: input, shape index: {}]   ;;  %s2161_s3 = inlined_call_operand.vmem [shape: f32[17,32], index: 3, kind: input, shape index: {}]   ;;  %s2162_s4 = inlined_call_operand.vmem [shape: f32[33,1], index: 4, kind: input, shape index: {}]   ;;  %s2163_s5 = inlined_call_operand.hbm [shape: f32[16,32,128], index: 5, kind: input, shape index: {}]   ;;  %s2164_s6 = inlined_call_operand.vmem [shape: f32[32,128], index: 6, kind: input, shape index: {}]   ;;  %s2165_s7 = inlined_call_operand.hbm [shape: f32[32,96], index: 7, kind: input, shape index: {}]   ;;  %s2166_s8 = inlined_call_operand.hbm [shape: f32[24,96], index: 8, kind: input, shape index: {}]   ;;  %s2167_s9 = inlined_call_operand.vmem [shape: f32[56,1], index: 9, kind: input, shape index: {}]   ;;  %s2168_s10 = inlined_call_operand.vmem [shape: f32[24,256], index: 10, kind: output, shape index: {0}]   ;;  %s2169_s11 = inlined_call_operand.vmem [shape: f32[2,128], index: 11, kind: output, shape index: {1}]  }
   0x1   :  { %18 = vsyncpa [#allocation5], 0 }
   0x2   :  { %19 = vsyncpa [#allocation8], 0  ;;  %s1640_s17 = smov [#allocation4]   ;;  %s1641_s19 = smov [#allocation2]  }
   0x3   :  { %s45_s18 = sshll.u32 %s1640_s17, 4  ;;  %s25_s20 = sshll.u32 %s1641_s19, 4  ;;  %s46_s18 = int_to_ptr.vmem [resolvable:$true] %s45_s18  ;;  %s26_s20 = int_to_ptr.vmem [resolvable:$true] %s25_s20 }
   0x4   :  { %s1562_s21 = scalar_lea.vmem %s46_s18, 8192  ;;  %p1567_p1 = scmp.lt.s32.totalorder %s46_s18, %s46_s18 }
   0x5   :  { %p1563_p0 = scmp.ne.s32.totalorder %s46_s18, %s1562_s21  ;;  %p1568_p2 = scmp.lt.s32.totalorder %s1562_s21, %s1562_s21 }
   0x7   :  { %p1569_p3 = por %p1568_p2, %p1567_p1 }
   0x9   :  { %p1570_p4 = pnand %p1569_p3, %p1563_p0 }
   0xb   :  { %1573 = shalt.err (!%p1570_p4)
}
   0xc   :  { %s1642_s22 = smov 128   ;;  %s1643_s23 = smov 8  }
   0xd   :  { %51 = dma.hbm_to_vmem [thread:$0]  %s2163_s5, 8192, %s46_s18, [#allocation5], %s1642_s22, %s1642_s22, %s1643_s23  }
   0xe   :  { %s1582_s26 = scalar_lea.vmem %s26_s20, 256  ;;  %p1587_p6 = scmp.lt.s32.totalorder %s26_s20, %s26_s20 }
   0xf   :  { %p1583_p5 = scmp.ne.s32.totalorder %s26_s20, %s1582_s26  ;;  %p1588_p7 = scmp.lt.s32.totalorder %s1582_s26, %s1582_s26 }
  0x11   :  { %p1589_p8 = por %p1588_p7, %p1587_p6 }
  0x13   :  { %p1590_p9 = pnand %p1589_p8, %p1583_p5 }
  0x15   :  { %1593 = shalt.err (!%p1590_p9)
}
  0x16   :  { %31 = dma.hbm_to_vmem [thread:$0]  %s2158_s0, 256, %s26_s20, [#allocation3], %s1642_s22, %s1642_s22, %s1643_s23  }
  0x17   :  { %s1644_s29 = smov [#allocation6]   ;;  %s1645_s12 = smov [#allocation7]  }
  0x18   :  { %s59_s30 = sshll.u32 %s1644_s29, 4  ;;  %s71_s13 = sshll.u32 %s1645_s12, 4  ;;  %s60_s30 = int_to_ptr.vmem [resolvable:$true] %s59_s30  ;;  %s72_s13 = int_to_ptr.vmem [resolvable:$true] %s71_s13 }
  0x19   :  { %s1602_s5 = scalar_lea.vmem %s60_s30, 512  ;;  %p1607_p11 = scmp.lt.s32.totalorder %s60_s30, %s60_s30 }
  0x1a   :  { %p1603_p10 = scmp.ne.s32.totalorder %s60_s30, %s1602_s5  ;;  %p1608_p12 = scmp.lt.s32.totalorder %s1602_s5, %s1602_s5 }
  0x1c   :  { %p1609_p13 = por %p1608_p12, %p1607_p11 }
  0x1e   :  { %p1610_p0 = pnand %p1609_p13, %p1603_p10 }
  0x20   :  { %1613 = shalt.err (!%p1610_p0)
}
  0x21   :  { %65 = dma.hbm_to_vmem [thread:$0]  %s2165_s7, 512, %s60_s30, [#allocation5], %s1642_s22, %s1642_s22, %s1643_s23  }
  0x22   :  { %s1622_s0 = scalar_lea.vmem %s72_s13, 384  ;;  %p1627_p2 = scmp.lt.s32.totalorder %s72_s13, %s72_s13 }
  0x23   :  { %p1623_p1 = scmp.ne.s32.totalorder %s72_s13, %s1622_s0  ;;  %p1628_p3 = scmp.lt.s32.totalorder %s1622_s0, %s1622_s0 }
  0x25   :  { %p1629_p4 = por %p1628_p3, %p1627_p2 }
  0x27   :  { %p1630_p5 = pnand %p1629_p4, %p1623_p1 }
  0x29   :  { %1633 = shalt.err (!%p1630_p5)
}
  0x2a   :  { %77 = dma.hbm_to_vmem [thread:$0]  %s2166_s8, 384, %s72_s13, [#allocation8], %s1642_s22, %s1642_s22, %s1643_s23  }
  0x2b   :  { %1634 = dma.done.wait [#allocation3], 256  }
  0x2c   :  { %1635 = vsyncadd [#allocation3], 4294967040 }
  0x2d   :  { %1636 = dma.done.wait [#allocation5], 8704  }
  0x2e   :  { %1637 = vsyncadd [#allocation5], 4294958592 }
  0x2f   :  { %1638 = dma.done.wait [#allocation8], 384  }
  0x30   :  { %1639 = vsyncadd [#allocation8], 4294966912  ;;  %vm103_vm0 = vcmask 261120   ;;  %v95_v0 = vld [vmem:[%s2160_s2 + $0x18] sm:$0xff]  ;;  %v94_v1 = vld [vmem:[%s2160_s2 + $0x10] sm:$0xff]  ;;  %v1646_v6 = vmov 32  }
  0x31   :  { %1418 = vmatprep.subr.mxu0 %v95_v0  ;;  %v97_v2 = vld [vmem:[#allocation2] sm:$0xff]  ;;  %v93_v3 = vld [vmem:[%s2160_s2 + $0x8] sm:$0xff]  ;;  %1541 = vset.pattern.permute.xlu0 %v1646_v6  ;;  %s1647_s26 = smov 16   ;;  %vm185_vm1 = vcmask 269568   ;;  %v1648_v51 = vmov 0.0   ;;  %vm211_vm2 = vcmask 269312  }
  0x32   :  { %1419 = vmatpush3.msra.mxu0 %v95_v0  ;;  %1426 = vmatprep.mubr.msk.f32.mxu0 %vm103_vm0, %v97_v2  ;;  %v92_v4 = vld [vmem:[%s2160_s2] sm:$0xff]  ;;  %v98_v5 = vld [vmem:[#allocation2 + $0x8] sm:$0xff]  ;;  %431 = vst [vmem:[%s2169_s11] sm:$0x3] %v1648_v51  ;;  %vm251_vm3 = vcmask 1040384   ;;  %vm432_vm4 = vcmask 123904   ;;  %vm434_vm5 = vcmask 255104  }
  0x33   :  { %1420 = vmatprep.subr.mxu0 %v94_v1  ;;  %v256_v7 = vld [vmem:[%s2159_s1] sm:$0x3]  ;;  %1429 = vmatprep.subr.mxu1 %v1648_v51  ;;  %v268_v52 = vld [vmem:[%s2161_s3 + $0x8] sm:$0xff]  ;;  %vm1649_vm6 = vmmov 0   ;;  %s1650_s16 = smov 112   ;;  %vm274_vm7 = vcmask 130048  }
  0x34   :  { %1421 = vmatpush3.msra.mxu0 %v94_v1  ;;  %258 = vrot.lane.b32.xlu1 %v256_v7, %s1647_s26  ;;  %v1358_v8 = vld [vmem:[%s2160_s2 + $0x20] ss:$0 sm:$0xff]  ;;  %s1651_s17 = smov 127   ;;  %s1652_s7 = smov 126   ;;  %vm1057_vm14 = vcmask 785408   ;;  %vm439_vm15 = vcmask 386304  }
  0x35   :  { %1422 = vmatprep.subr.mxu0 %v93_v3  ;;  %1430 = vmatpush3.msra.mxu1 %v268_v52  ;;  %s1653_s18 = smov 125   ;;  %s1654_s19 = smov 124   ;;  %v454_v52 = vld [vmem:[#allocation4 + $0x18] sm:$0xff] }
  0x36   :  { %1423 = vmatpush3.msra.mxu0 %v93_v3  ;;  %1431 = vmatprep.subr.mxu1 %v1648_v51  ;;  %s1655_s20 = smov 123   ;;  %s1656_s21 = smov 122  }
  0x37   :  { %1424 = vmatprep.subr.mxu0 %v92_v4  ;;  %1433 = vmatprep.mubr.msk.f32.mxu1 %vm1649_vm6, %v1648_v51  ;;  %s1657_s8 = smov 121   ;;  %s1658_s22 = smov 120  }
  0x38   :  { %1425 = vmatpush3.msra.mxu0 %v92_v4  ;;  %s1659_s23 = smov 119   ;;  %s1660_s24 = smov 118  }
  0x39   :  { %1427 = vmatmul.mubr.msk.f32.vlgmr.msra.gmra.mxu0 %vm103_vm0, %v98_v5  ;;  %s1661_s25 = smov 117   ;;  %s1662_s26 = smov 116  }
  0x3a   :  { %1134 = vmatprep.mubr.f32.mxu0 %v1648_v51  ;;  %s1663_s27 = smov 115   ;;  %s1664_s28 = smov 114  }
  0x3b   :  { %s1665_s1 = smov 113  }
  0xf9   :  { %v1428_v9 = vpop.f32.mrf.mxu0 }
  0xfa   :  { %v182_v10 = vadd.f32 %v1428_v9, %v1358_v8 }
  0xfb   :  { %v176_v11 = vpop.f32.mrf.mxu0 }
  0xfc   :  { %v219_v12 = vsel %vm185_vm1, %v182_v10, -inf  ;;  %v177_v13 = vadd.f32 %v1358_v8, %v176_v11  ;;  %v259_v11 = vpop.permute.xlu1 %258 }
  0xfd   :  { %v220_v14 = vrot.slane %v219_v12, 4 }
  0xfe   :  { %v186_v15 = vsel %vm185_vm1, %v177_v13, -inf }
  0xff   :  { %v221_v16 = vmax.f32 %v219_v12, %v220_v14  ;;  %v187_v17 = vrot.slane %v186_v15, 4 }
 0x101   :  { %v222_v18 = vrot.slane %v221_v16, 2  ;;  %v188_v19 = vmax.f32 %v186_v15, %v187_v17  ;;  %v352_v17 = vld [vmem:[%s2162_s4 + $0x18] sm:$0xff] }
 0x103   :  { %v223_v20 = vmax.f32 %v221_v16, %v222_v18  ;;  %v189_v21 = vrot.slane %v188_v19, 2  ;;  %v351_v18 = vld [vmem:[%s2162_s4 + $0x10] sm:$0xff] }
 0x105   :  { %v224_v22 = vrot.slane %v223_v20, 1  ;;  %v190_v23 = vmax.f32 %v188_v19, %v189_v21  ;;  %v350_v19 = vld [vmem:[%s2162_s4 + $0x8] sm:$0xff] }
 0x107   :  { %v225_v24 = vmax.f32 %v223_v20, %v224_v22  ;;  %v191_v25 = vrot.slane %v190_v23, 1  ;;  %v349_v20 = vld [vmem:[%s2162_s4] sm:$0xff] }
 0x109   :  { %v226_v26 = vsub.f32 %v182_v10, %v225_v24  ;;  %v192_v27 = vmax.f32 %v190_v23, %v191_v25 }
 0x10b   :  { %v227_v28 = vmul.f32 1.442695, %v226_v26  ;;  %v193_v29 = vsub.f32 %v177_v13, %v192_v27 }
 0x10d   :  { %1544 = vpow2.f32 %v227_v28  ;;  %v194_v30 = vmul.f32 1.442695, %v193_v29 }
 0x10f   :  { %1546 = vpow2.f32 %v194_v30 }
 0x11a   :  { %v1545_v31 = vpop.eup %1544 }
 0x11b   :  { %v229_v32 = vsel %vm185_vm1, %v1545_v31, 0.0 }
 0x11c   :  { %v1547_v33 = vpop.eup %1546  ;;  %v230_v34 = vrot.slane %v229_v32, 4 }
 0x11d   :  { %v196_v35 = vsel %vm185_vm1, %v1547_v33, 0.0 }
 0x11e   :  { %v231_v36 = vadd.f32 %v230_v34, %v229_v32  ;;  %v197_v37 = vrot.slane %v196_v35, 4 }
 0x120   :  { %v232_v38 = vrot.slane %v231_v36, 2  ;;  %v198_v39 = vadd.f32 %v197_v37, %v196_v35 }
 0x122   :  { %v233_v40 = vadd.f32 %v232_v38, %v231_v36  ;;  %v199_v41 = vrot.slane %v198_v39, 2 }
 0x124   :  { %v234_v42 = vrot.slane %v233_v40, 1  ;;  %v200_v43 = vadd.f32 %v199_v41, %v198_v39 }
 0x126   :  { %v201_v44 = vrot.slane %v200_v43, 1  ;;  %v235_v45 = vadd.f32 %v234_v42, %v233_v40 }
 0x128   :  { %v202_v46 = vadd.f32 %v201_v44, %v200_v43 }
 0x12a   :  { %1548 = vrcp.f32 %v202_v46  ;;  %v451_v46 = vld [vmem:[#allocation4] sm:$0xff] }
 0x12b   :  { %1550 = vrcp.f32 %v235_v45 }
 0x137   :  { %v1549_v47 = vpop.eup %1548 }
 0x138   :  { %v204_v48 = vmul.f32 %v1549_v47, %v1547_v33  ;;  %v1551_v49 = vpop.eup %1550 }
 0x139   :  { %v237_v50 = vmul.f32 %v1551_v49, %v1545_v31 }
 0x13a   :  { %207 = vperm.xlu0 %1541, %v204_v48   ;;  %v452_v48 = vld [vmem:[#allocation4 + $0x8] sm:$0xff] }
 0x13e   :  { %240 = vperm.xlu0 %1541, %v237_v50   ;;  %v453_v50 = vld [vmem:[#allocation4 + $0x10] sm:$0xff] }
 0x1b5   :  { %v208_v53 = vpop.permute.xlu0 %207 }
 0x1b6   :  { %v210_v54 = vmul.f32 %v208_v53, %v177_v13 }
 0x1b8   :  { %v212_v55 = vsel %vm211_vm2, %v210_v54, 0.0 }
 0x1b9   :  { %v213_v56 = vrot.slane %v212_v55, 4  ;;  %v241_v57 = vpop.permute.xlu0 %240 }
 0x1ba   :  { %v243_v58 = vmul.f32 %v241_v57, %v182_v10  ;;  %v267_v10 = vld [vmem:[%s2161_s3] sm:$0xff] }
 0x1bb   :  { %v214_v59 = vadd.f32 %v213_v56, %v212_v55  ;;  %1432 = vmatpush3.msra.mxu1 %v267_v10  ;;  %v447_v56 = vld [vmem:[%s2164_s6] sm:$0xff] }
 0x1bc   :  { %v244_v60 = vsel %vm211_vm2, %v243_v58, 0.0  ;;  %1436 = vmatprep.subr.mxu1 %v1648_v51  ;;  %v448_v58 = vld [vmem:[%s2164_s6 + $0x8] sm:$0xff] }
 0x1bd   :  { %v215_v61 = vrot.slane %v214_v59, 2  ;;  %v245_v62 = vrot.slane %v244_v60, 4 }
 0x1bf   :  { %v216_v63 = vadd.f32 %v215_v61, %v214_v59  ;;  %v246_v0 = vadd.f32 %v245_v62, %v244_v60  ;;  %v449_v59 = vld [vmem:[%s2164_s6 + $0x10] sm:$0xff] }
 0x1c0   :  { %v479_v62 = vld [vmem:[#allocation4 + $0x20] sm:$0xff] }
 0x1c1   :  { %v247_v1 = vrot.slane %v246_v0, 2  ;;  %v217_v2 = vrot.slane %v216_v63, 1 }
 0x1c3   :  { %v248_v3 = vadd.f32 %v247_v1, %v246_v0  ;;  %v218_v5 = vadd.f32 %v217_v2, %v216_v63  ;;  %v450_v1 = vld [vmem:[%s2164_s6 + $0x18] sm:$0xff] }
 0x1c5   :  { %v249_v4 = vrot.slane %v248_v3, 1 }
 0x1c7   :  { %v250_v6 = vadd.f32 %v249_v4, %v248_v3  ;;  %v480_v4 = vld [vmem:[#allocation4 + $0x28] sm:$0xff] }
 0x1c9   :  { %v252_v7 = vsel %vm251_vm3, %v218_v5, %v250_v6  ;;  %v481_v5 = vld [vmem:[#allocation4 + $0x30] sm:$0xff] }
 0x1ca   :  { %v253_v8 = vmul.f32 0.5, %v252_v7  ;;  %433 = vst.msk [vmem:[%s2169_s11] sm:$0x3] %vm432_vm4, %v252_v7 }
 0x1cb   :  { %435 = vst.msk [vmem:[%s2169_s11] sm:$0x3] %vm434_vm5, %v252_v7 }
 0x1cc   :  { %v254_v9 = vmul.f32 1.442695, %v253_v8  ;;  %v482_v8 = vld [vmem:[#allocation4 + $0x38] sm:$0xff] }
 0x1ce   :  { %1552 = vpow2.f32 %v254_v9 }
 0x1db   :  { %v1553_v12 = vpop.eup %1552 }
 0x1dc   :  { %v261_v13 = vmul.f32 %v1553_v12, %v259_v11 }
 0x1de   :  { %263 = vrot.lane.b32.xlu1 %v261_v13, %s1650_s16 }
 0x250   :  { %v264_v14 = vpop.permute.xlu1 %263 }
 0x251   :  { %v1800_v15 = vadd.f32 %v264_v14, %v252_v7 }
 0x253   :  { %483 = vrot.lane.b32.xlu0 %v1800_v15, %s1651_s17  ;;  %1434 = vmatmul.mubr.msk.f32.vlgmr.msra.gmra.mxu1 %vm274_vm7, %v1800_v15  ;;  %1447 = vpush %v1800_v15  ;;  %v466_v16 = vrot.slane %v1800_v15, 1 }
 0x254   :  { %1444 = vmatprep.mubr.msk.f32.mxu1 %vm1649_vm6, %v1648_v51  ;;  %1437 = vmatpush3.msra.mxu1 %v352_v17 }
 0x255   :  { %496 = vrot.lane.b32.xlu1 %v466_v16, %s1651_s17  ;;  %1449 = vpush %v466_v16  ;;  %1438 = vmatprep.subr.mxu1 %v1648_v51 }
 0x256   :  { %1439 = vmatpush3.msra.mxu1 %v351_v18 }
 0x257   :  { %514 = vrot.lane.b32.xlu0 %v1800_v15, %s1652_s7  ;;  %1440 = vmatprep.subr.mxu1 %v1648_v51 }
 0x258   :  { %1441 = vmatpush3.msra.mxu1 %v350_v19 }
 0x259   :  { %527 = vrot.lane.b32.xlu1 %v466_v16, %s1652_s7  ;;  %1442 = vmatprep.subr.mxu1 %v1648_v51 }
 0x25a   :  { %1443 = vmatpush3.msra.mxu1 %v349_v20 }
 0x25b   :  { %545 = vrot.lane.b32.xlu0 %v1800_v15, %s1653_s18 }
 0x25d   :  { %558 = vrot.lane.b32.xlu1 %v466_v16, %s1653_s18 }
 0x25f   :  { %576 = vrot.lane.b32.xlu0 %v1800_v15, %s1654_s19 }
 0x261   :  { %589 = vrot.lane.b32.xlu1 %v466_v16, %s1654_s19 }
 0x263   :  { %607 = vrot.lane.b32.xlu0 %v1800_v15, %s1655_s20 }
 0x265   :  { %620 = vrot.lane.b32.xlu1 %v466_v16, %s1655_s20 }
 0x267   :  { %638 = vrot.lane.b32.xlu0 %v1800_v15, %s1656_s21 }
 0x269   :  { %651 = vrot.lane.b32.xlu1 %v466_v16, %s1656_s21 }
 0x26b   :  { %669 = vrot.lane.b32.xlu0 %v1800_v15, %s1657_s8 }
 0x26d   :  { %682 = vrot.lane.b32.xlu1 %v466_v16, %s1657_s8 }
 0x26f   :  { %700 = vrot.lane.b32.xlu0 %v1800_v15, %s1658_s22 }
 0x271   :  { %713 = vrot.lane.b32.xlu1 %v466_v16, %s1658_s22 }
 0x273   :  { %731 = vrot.lane.b32.xlu0 %v1800_v15, %s1659_s23 }
 0x275   :  { %744 = vrot.lane.b32.xlu1 %v466_v16, %s1659_s23 }
 0x277   :  { %762 = vrot.lane.b32.xlu0 %v1800_v15, %s1660_s24 }
 0x279   :  { %775 = vrot.lane.b32.xlu1 %v466_v16, %s1660_s24 }
 0x27b   :  { %793 = vrot.lane.b32.xlu0 %v1800_v15, %s1661_s25 }
 0x27d   :  { %806 = vrot.lane.b32.xlu1 %v466_v16, %s1661_s25 }
 0x27f   :  { %824 = vrot.lane.b32.xlu0 %v1800_v15, %s1662_s26 }
 0x281   :  { %837 = vrot.lane.b32.xlu1 %v466_v16, %s1662_s26 }
 0x283   :  { %855 = vrot.lane.b32.xlu0 %v1800_v15, %s1663_s27 }
 0x284   :  { %s1448_s0 = spop %1447 }
 0x285   :  { %868 = vrot.lane.b32.xlu1 %v466_v16, %s1663_s27  ;;  %v456_v47 = vstv %s1448_s0 }
 0x286   :  { %s1450_s16 = spop %1449  ;;  %v458_v53 = vmul.f32 %v456_v47, %v451_v46  ;;  %v459_v57 = vmul.f32 %v456_v47, %v452_v48  ;;  %v460_v60 = vmul.f32 %v456_v47, %v453_v50  ;;  %v461_v61 = vmul.f32 %v456_v47, %v454_v52 }
 0x287   :  { %886 = vrot.lane.b32.xlu0 %v1800_v15, %s1664_s28  ;;  %v468_v54 = vstv %s1450_s16 }
 0x288   :  { %v470_v2 = vmul.f32 %v468_v54, %v451_v46  ;;  %v471_v3 = vmul.f32 %v468_v54, %v452_v48  ;;  %v462_v6 = vadd.f32 %v458_v53, %v447_v56  ;;  %v472_v7 = vmul.f32 %v468_v54, %v453_v50  ;;  %v543_v50 = vld [vmem:[#allocation4 + $0x70] sm:$0xff] }
 0x289   :  { %899 = vrot.lane.b32.xlu1 %v466_v16, %s1664_s28  ;;  %v463_v10 = vadd.f32 %v459_v57, %v448_v58  ;;  %v473_v11 = vmul.f32 %v468_v54, %v454_v52  ;;  %v464_v14 = vadd.f32 %v460_v60, %v449_v59 }
 0x28a   :  { %v474_v20 = vadd.f32 %v470_v2, %v447_v56 }
 0x28b   :  { %917 = vrot.lane.b32.xlu0 %v1800_v15, %s1665_s1 }
 0x28d   :  { %930 = vrot.lane.b32.xlu1 %v466_v16, %s1665_s1  ;;  %v465_v16 = vadd.f32 %v461_v61, %v450_v1 }
 0x2c5   :  { %v484_v21 = vpop.permute.xlu0 %483 }
 0x2c6   :  { %1451 = vpush %v484_v21  ;;  %v475_v21 = vadd.f32 %v471_v3, %v448_v58 }
 0x2c7   :  { %v497_v22 = vpop.permute.xlu1 %496 }
 0x2c8   :  { %1453 = vpush %v497_v22 }
 0x2c9   :  { %v515_v23 = vpop.permute.xlu0 %514 }
 0x2ca   :  { %1455 = vpush %v515_v23  ;;  %v510_v23 = vld [vmem:[#allocation4 + $0x40] sm:$0xff] }
 0x2cb   :  { %v528_v24 = vpop.permute.xlu1 %527 }
 0x2cc   :  { %1457 = vpush %v528_v24  ;;  %v511_v24 = vld [vmem:[#allocation4 + $0x48] sm:$0xff] }
 0x2cd   :  { %v546_v25 = vpop.permute.xlu0 %545 }
 0x2ce   :  { %1459 = vpush %v546_v25 }
 0x2cf   :  { %v559_v26 = vpop.permute.xlu1 %558 }
 0x2d0   :  { %1461 = vpush %v559_v26  ;;  %v476_v26 = vadd.f32 %v472_v7, %v449_v59  ;;  %v575_v7 = vld [vmem:[#allocation4 + $0x98] sm:$0xff] }
 0x2d1   :  { %v577_v27 = vpop.permute.xlu0 %576 }
 0x2d2   :  { %1463 = vpush %v577_v27 }
 0x2d3   :  { %v590_v28 = vpop.permute.xlu1 %589 }
 0x2d4   :  { %1465 = vpush %v590_v28 }
 0x2d5   :  { %v608_v29 = vpop.permute.xlu0 %607 }
 0x2d6   :  { %1467 = vpush %v608_v29 }
 0x2d7   :  { %v621_v30 = vpop.permute.xlu1 %620 }
 0x2d8   :  { %1469 = vpush %v621_v30  ;;  %v512_v30 = vld [vmem:[#allocation4 + $0x50] sm:$0xff] }
 0x2d9   :  { %v639_v31 = vpop.permute.xlu0 %638 }
 0x2da   :  { %1471 = vpush %v639_v31  ;;  %v513_v31 = vld [vmem:[#allocation4 + $0x58] sm:$0xff] }
 0x2db   :  { %v652_v32 = vpop.permute.xlu1 %651 }
 0x2dc   :  { %1473 = vpush %v652_v32  ;;  %v477_v32 = vadd.f32 %v473_v11, %v450_v1  ;;  %v572_v1 = vld [vmem:[#allocation4 + $0x80] sm:$0xff] }
 0x2dd   :  { %v670_v33 = vpop.permute.xlu0 %669 }
 0x2de   :  { %1475 = vpush %v670_v33 }
 0x2df   :  { %v683_v34 = vpop.permute.xlu1 %682 }
 0x2e0   :  { %1477 = vpush %v683_v34 }
 0x2e1   :  { %v701_v35 = vpop.permute.xlu0 %700 }
 0x2e2   :  { %1479 = vpush %v701_v35 }
 0x2e3   :  { %v714_v36 = vpop.permute.xlu1 %713 }
 0x2e4   :  { %1481 = vpush %v714_v36 }
 0x2e5   :  { %v732_v37 = vpop.permute.xlu0 %731 }
 0x2e6   :  { %1483 = vpush %v732_v37 }
 0x2e7   :  { %v745_v38 = vpop.permute.xlu1 %744 }
 0x2e8   :  { %1485 = vpush %v745_v38 }
 0x2e9   :  { %v763_v39 = vpop.permute.xlu0 %762 }
 0x2ea   :  { %1487 = vpush %v763_v39 }
 0x2eb   :  { %v776_v40 = vpop.permute.xlu1 %775 }
 0x2ec   :  { %1489 = vpush %v776_v40 }
 0x2ed   :  { %v794_v41 = vpop.permute.xlu0 %793 }
 0x2ee   :  { %1491 = vpush %v794_v41 }
 0x2ef   :  { %v807_v42 = vpop.permute.xlu1 %806 }
 0x2f0   :  { %1493 = vpush %v807_v42 }
 0x2f1   :  { %v825_v43 = vpop.permute.xlu0 %824 }
 0x2f2   :  { %1495 = vpush %v825_v43  ;;  %v541_v43 = vld [vmem:[#allocation4 + $0x60] sm:$0xff] }
 0x2f3   :  { %v838_v44 = vpop.permute.xlu1 %837 }
 0x2f4   :  { %1497 = vpush %v838_v44 }
 0x2f5   :  { %v856_v45 = vpop.permute.xlu0 %855 }
 0x2f6   :  { %1499 = vpush %v856_v45 }
 0x2f7   :  { %v869_v49 = vpop.permute.xlu1 %868  ;;  %s1452_s7 = spop %1451 }
 0x2f8   :  { %1501 = vpush %v869_v49  ;;  %v486_v63 = vstv %s1452_s7  ;;  %v542_v49 = vld [vmem:[#allocation4 + $0x68] sm:$0xff] }
 0x2f9   :  { %v887_v55 = vpop.permute.xlu0 %886  ;;  %s1454_s23 = spop %1453  ;;  %v488_v12 = vmul.f32 %v486_v63, %v479_v62  ;;  %v489_v17 = vmul.f32 %v486_v63, %v480_v4  ;;  %v490_v18 = vmul.f32 %v486_v63, %v481_v5  ;;  %v491_v22 = vmul.f32 %v486_v63, %v482_v8 }
 0x2fa   :  { %1503 = vpush %v887_v55  ;;  %v499_v13 = vstv %s1454_s23  ;;  %v544_v55 = vld [vmem:[#allocation4 + $0x78] sm:$0xff] }
 0x2fb   :  { %v900_v0 = vpop.permute.xlu1 %899  ;;  %s1456_s26 = spop %1455  ;;  %v501_v27 = vmul.f32 %v499_v13, %v479_v62  ;;  %v502_v28 = vmul.f32 %v499_v13, %v480_v4  ;;  %v503_v29 = vmul.f32 %v499_v13, %v481_v5  ;;  %v492_v33 = vadd.f32 %v488_v12, %v462_v6  ;;  %v573_v5 = vld [vmem:[#allocation4 + $0x88] sm:$0xff]  ;;  %v574_v6 = vld [vmem:[#allocation4 + $0x90] sm:$0xff] }
 0x2fc   :  { %1505 = vpush %v900_v0  ;;  %v517_v25 = vstv %s1456_s26  ;;  %v504_v34 = vmul.f32 %v499_v13, %v482_v8  ;;  %v493_v36 = vadd.f32 %v489_v17, %v463_v10  ;;  %v494_v37 = vadd.f32 %v490_v18, %v464_v14 }
 0x2fd   :  { %v918_v9 = vpop.permute.xlu0 %917  ;;  %s1458_s6 = spop %1457  ;;  %v519_v38 = vmul.f32 %v517_v25, %v510_v23  ;;  %v520_v39 = vmul.f32 %v517_v25, %v511_v24  ;;  %v495_v40 = vadd.f32 %v491_v22, %v465_v16  ;;  %v521_v41 = vmul.f32 %v517_v25, %v512_v30 }
 0x2fe   :  { %1507 = vpush %v918_v9  ;;  %v530_v35 = vstv %s1458_s6  ;;  %v522_v42 = vmul.f32 %v517_v25, %v513_v31  ;;  %v505_v45 = vadd.f32 %v501_v27, %v474_v20  ;;  %v506_v46 = vadd.f32 %v502_v28, %v475_v21 }
 0x2ff   :  { %v931_v19 = vpop.permute.xlu1 %930  ;;  %s1460_s27 = spop %1459  ;;  %v507_v47 = vadd.f32 %v503_v29, %v476_v26  ;;  %v532_v48 = vmul.f32 %v530_v35, %v510_v23  ;;  %v508_v52 = vadd.f32 %v504_v34, %v477_v32  ;;  %v533_v53 = vmul.f32 %v530_v35, %v511_v24  ;;  %v603_v29 = vld [vmem:[#allocation4 + $0xa0] sm:$0xff] }
 0x300   :  { %1509 = vpush %v931_v19  ;;  %v548_v44 = vstv %s1460_s27  ;;  %v534_v54 = vmul.f32 %v530_v35, %v512_v30  ;;  %v523_v57 = vadd.f32 %v519_v38, %v492_v33  ;;  %v524_v58 = vadd.f32 %v520_v39, %v493_v36  ;;  %v604_v30 = vld [vmem:[#allocation4 + $0xa8] sm:$0xff]  ;;  %v606_v36 = vld [vmem:[#allocation4 + $0xb8] sm:$0xff] }
 0x301   :  { %s1462_s28 = spop %1461  ;;  %v535_v59 = vmul.f32 %v530_v35, %v513_v31  ;;  %v550_v60 = vmul.f32 %v548_v44, %v541_v43  ;;  %v525_v61 = vadd.f32 %v521_v41, %v494_v37  ;;  %v526_v62 = vadd.f32 %v522_v42, %v495_v40  ;;  %v605_v35 = vld [vmem:[#allocation4 + $0xb0] sm:$0xff] }
 0x302   :  { %v561_v56 = vstv %s1462_s28  ;;  %v551_v63 = vmul.f32 %v548_v44, %v542_v49  ;;  %v552_v0 = vmul.f32 %v548_v44, %v543_v50  ;;  %v536_v2 = vadd.f32 %v532_v48, %v505_v45  ;;  %v634_v45 = vld [vmem:[#allocation4 + $0xc0] sm:$0xff] }
 0x303   :  { %s1464_s1 = spop %1463  ;;  %v553_v3 = vmul.f32 %v548_v44, %v544_v55  ;;  %v563_v4 = vmul.f32 %v561_v56, %v541_v43  ;;  %v537_v9 = vadd.f32 %v533_v53, %v506_v46  ;;  %v538_v10 = vadd.f32 %v534_v54, %v507_v47  ;;  %v635_v46 = vld [vmem:[#allocation4 + $0xc8] sm:$0xff]  ;;  %v636_v53 = vld [vmem:[#allocation4 + $0xd0] sm:$0xff] }
 0x304   :  { %v579_v8 = vstv %s1464_s1  ;;  %v564_v11 = vmul.f32 %v561_v56, %v542_v49  ;;  %v565_v12 = vmul.f32 %v561_v56, %v543_v50  ;;  %v539_v13 = vadd.f32 %v535_v59, %v508_v52  ;;  %s1666_s1 = smov 1  }
 0x305   :  { %s1466_s2 = spop %1465  ;;  %v554_v14 = vadd.f32 %v550_v60, %v523_v57  ;;  %v566_v16 = vmul.f32 %v561_v56, %v544_v55  ;;  %v581_v18 = vmul.f32 %v579_v8, %v572_v1  ;;  %v582_v19 = vmul.f32 %v579_v8, %v573_v5 }
 0x306   :  { %v592_v17 = vstv %s1466_s2  ;;  %v583_v20 = vmul.f32 %v579_v8, %v574_v6  ;;  %v584_v21 = vmul.f32 %v579_v8, %v575_v7  ;;  %v555_v22 = vadd.f32 %v551_v63, %v524_v58  ;;  %v637_v58 = vld [vmem:[#allocation4 + $0xd8] sm:$0xff] }
 0x307   :  { %s1468_s29 = spop %1467  ;;  %v556_v23 = vadd.f32 %v552_v0, %v525_v61  ;;  %v557_v24 = vadd.f32 %v553_v3, %v526_v62  ;;  %v567_v25 = vadd.f32 %v563_v4, %v536_v2  ;;  %v568_v26 = vadd.f32 %v564_v11, %v537_v9 }
 0x308   :  { %v569_v27 = vadd.f32 %v565_v12, %v538_v10  ;;  %v594_v28 = vmul.f32 %v592_v17, %v572_v1  ;;  %v610_v31 = vstv %s1468_s29  ;;  %v570_v32 = vadd.f32 %v566_v16, %v539_v13  ;;  %v665_v12 = vld [vmem:[#allocation4 + $0xe0] sm:$0xff]  ;;  %v666_v13 = vld [vmem:[#allocation4 + $0xe8] sm:$0xff] }
 0x309   :  { %s1470_s30 = spop %1469  ;;  %v595_v33 = vmul.f32 %v592_v17, %v573_v5  ;;  %v596_v34 = vmul.f32 %v592_v17, %v574_v6  ;;  %v585_v38 = vadd.f32 %v581_v18, %v554_v14  ;;  %v586_v39 = vadd.f32 %v582_v19, %v555_v22  ;;  %v1361_v16 = vld [vmem:[%s2161_s3 + $0x10] ss:$0 sm:$0xff] }
 0x30a   :  { %v623_v37 = vstv %s1470_s30  ;;  %v587_v40 = vadd.f32 %v583_v20, %v556_v23  ;;  %v588_v41 = vadd.f32 %v584_v21, %v557_v24  ;;  %v597_v42 = vmul.f32 %v592_v17, %v575_v7  ;;  %v667_v20 = vld [vmem:[#allocation4 + $0xf0] sm:$0xff]  ;;  %v668_v21 = vld [vmem:[#allocation4 + $0xf8] sm:$0xff] }
 0x30b   :  { %s1472_s12 = spop %1471  ;;  %v612_v43 = vmul.f32 %v610_v31, %v603_v29  ;;  %v613_v44 = vmul.f32 %v610_v31, %v604_v30  ;;  %v598_v48 = vadd.f32 %v594_v28, %v567_v25  ;;  %v614_v49 = vmul.f32 %v610_v31, %v605_v35 }
 0x30c   :  { %v641_v47 = vstv %s1472_s12  ;;  %v615_v50 = vmul.f32 %v610_v31, %v606_v36  ;;  %v625_v52 = vmul.f32 %v623_v37, %v603_v29  ;;  %v599_v54 = vadd.f32 %v595_v33, %v568_v26 }
 0x30d   :  { %s1474_s13 = spop %1473  ;;  %v600_v55 = vadd.f32 %v596_v34, %v569_v27  ;;  %v626_v56 = vmul.f32 %v623_v37, %v604_v30  ;;  %v627_v57 = vmul.f32 %v623_v37, %v605_v35  ;;  %v628_v60 = vmul.f32 %v623_v37, %v606_v36  ;;  %v696_v34 = vld [vmem:[#allocation4 + $0x100] sm:$0xff] }
 0x30e   :  { %v643_v61 = vmul.f32 %v641_v47, %v634_v45  ;;  %v644_v62 = vmul.f32 %v641_v47, %v635_v46  ;;  %v654_v63 = vstv %s1474_s13  ;;  %v601_v0 = vadd.f32 %v597_v42, %v570_v32 }
 0x30f   :  { %s1476_s5 = spop %1475  ;;  %v616_v1 = vadd.f32 %v612_v43, %v585_v38  ;;  %v617_v2 = vadd.f32 %v613_v44, %v586_v39  ;;  %v645_v3 = vmul.f32 %v641_v47, %v636_v53  ;;  %v618_v5 = vadd.f32 %v614_v49, %v587_v40  ;;  %v697_v40 = vld [vmem:[#allocation4 + $0x108] sm:$0xff] }
 0x310   :  { %v619_v6 = vadd.f32 %v615_v50, %v588_v41  ;;  %v629_v7 = vadd.f32 %v625_v52, %v598_v48  ;;  %v646_v8 = vmul.f32 %v641_v47, %v637_v58  ;;  %v630_v9 = vadd.f32 %v626_v56, %v599_v54  ;;  %v698_v41 = vld [vmem:[#allocation4 + $0x110] sm:$0xff]  ;;  %v699_v48 = vld [vmem:[#allocation4 + $0x118] sm:$0xff] }
 0x311   :  { %s1478_s14 = spop %1477  ;;  %v631_v10 = vadd.f32 %v627_v57, %v600_v55  ;;  %v656_v11 = vmul.f32 %v654_v63, %v634_v45  ;;  %v672_v14 = vstv %s1476_s5  ;;  %v632_v17 = vadd.f32 %v628_v60, %v601_v0  ;;  %v728_v60 = vld [vmem:[#allocation4 + $0x128] sm:$0xff] }
 0x312   :  { %v647_v18 = vadd.f32 %v643_v61, %v616_v1  ;;  %v648_v19 = vadd.f32 %v644_v62, %v617_v2  ;;  %v685_v22 = vstv %s1478_s14  ;;  %v649_v23 = vadd.f32 %v645_v3, %v618_v5  ;;  %v729_v1 = vld [vmem:[#allocation4 + $0x130] sm:$0xff]  ;;  %v730_v2 = vld [vmem:[#allocation4 + $0x138] sm:$0xff] }
 0x313   :  { %v344_v59 = vpop.f32.mrf.mxu1  ;;  %s1480_s16 = spop %1479  ;;  %v657_v24 = vmul.f32 %v654_v63, %v635_v46  ;;  %v658_v25 = vmul.f32 %v654_v63, %v636_v53  ;;  %v659_v26 = vmul.f32 %v654_v63, %v637_v58  ;;  %v650_v27 = vadd.f32 %v646_v8, %v619_v6 }
 0x314   :  { %v674_v28 = vmul.f32 %v672_v14, %v665_v12  ;;  %v675_v29 = vmul.f32 %v672_v14, %v666_v13  ;;  %v345_v30 = vadd.f32 %v1361_v16, %v344_v59  ;;  %v660_v31 = vadd.f32 %v656_v11, %v629_v7  ;;  %v727_v59 = vld [vmem:[#allocation4 + $0x120] sm:$0xff] }
 0x315   :  { %v1435_v4 = vpop.f32.mrf.mxu1  ;;  %v676_v32 = vmul.f32 %v672_v14, %v667_v20  ;;  %v677_v33 = vmul.f32 %v672_v14, %v668_v21  ;;  %v703_v35 = vstv %s1480_s16  ;;  %s1482_s3 = spop %1481  ;;  %v687_v36 = vmul.f32 %v685_v22, %v665_v12  ;;  %v758_v16 = vld [vmem:[#allocation4 + $0x140] sm:$0xff] }
 0x316   :  { %v688_v37 = vmul.f32 %v685_v22, %v666_v13  ;;  %v689_v38 = vmul.f32 %v685_v22, %v667_v20  ;;  %v348_v39 = vmax.f32 %v345_v30, 0.0  ;;  %v661_v42 = vadd.f32 %v657_v24, %v630_v9 }
 0x317   :  { %v662_v43 = vadd.f32 %v658_v25, %v631_v10  ;;  %v663_v44 = vadd.f32 %v659_v26, %v632_v17  ;;  %v690_v45 = vmul.f32 %v685_v22, %v668_v21  ;;  %s1484_s7 = spop %1483  ;;  %v678_v46 = vadd.f32 %v674_v28, %v647_v18  ;;  %v759_v22 = vld [vmem:[#allocation4 + $0x148] sm:$0xff]  ;;  %v760_v26 = vld [vmem:[#allocation4 + $0x150] sm:$0xff] }
 0x318   :  { %v679_v47 = vadd.f32 %v675_v29, %v648_v19  ;;  %v705_v49 = vmul.f32 %v703_v35, %v696_v34  ;;  %v716_v50 = vstv %s1482_s3  ;;  %1445 = vmatmul.mubr.msk.f32.vlgmr.msra.gmra.mxu1 %vm103_vm0, %v348_v39  ;;  %v680_v52 = vadd.f32 %v676_v32, %v649_v23 }
 0x319   :  { %s1486_s18 = spop %1485  ;;  %v681_v53 = vadd.f32 %v677_v33, %v650_v27  ;;  %v706_v54 = vmul.f32 %v703_v35, %v697_v40  ;;  %v707_v55 = vmul.f32 %v703_v35, %v698_v41  ;;  %1322 = vmatprep.mubr.f32.mxu1 %v1648_v51  ;;  %v691_v56 = vadd.f32 %v687_v36, %v660_v31  ;;  %v761_v31 = vld [vmem:[#allocation4 + $0x158] sm:$0xff] }
 0x31a   :  { %v692_v57 = vadd.f32 %v688_v37, %v661_v42  ;;  %v693_v58 = vadd.f32 %v689_v38, %v662_v43  ;;  %v734_v61 = vstv %s1484_s7  ;;  %v694_v62 = vadd.f32 %v690_v45, %v663_v44  ;;  %v791_v42 = vld [vmem:[#allocation4 + $0x170] sm:$0xff] }
 0x31b   :  { %v708_v63 = vmul.f32 %v703_v35, %v699_v48  ;;  %v718_v0 = vmul.f32 %v716_v50, %v696_v34  ;;  %v747_v3 = vstv %s1486_s18  ;;  %s1488_s19 = spop %1487  ;;  %v709_v4 = vadd.f32 %v705_v49, %v678_v46 }
 0x31c   :  { %v719_v5 = vmul.f32 %v716_v50, %v697_v40  ;;  %v720_v6 = vmul.f32 %v716_v50, %v698_v41  ;;  %v721_v7 = vmul.f32 %v716_v50, %v699_v48  ;;  %v710_v8 = vadd.f32 %v706_v54, %v679_v47  ;;  %v789_v40 = vld [vmem:[#allocation4 + $0x160] sm:$0xff]  ;;  %v790_v41 = vld [vmem:[#allocation4 + $0x168] sm:$0xff]  ;;  %v792_v47 = vld [vmem:[#allocation4 + $0x178] sm:$0xff] }
 0x31d   :  { %v711_v9 = vadd.f32 %v707_v55, %v680_v52  ;;  %v736_v10 = vmul.f32 %v734_v61, %v727_v59  ;;  %v737_v11 = vmul.f32 %v734_v61, %v728_v60  ;;  %s1490_s20 = spop %1489  ;;  %v738_v12 = vmul.f32 %v734_v61, %v729_v1 }
 0x31e   :  { %v739_v13 = vmul.f32 %v734_v61, %v730_v2  ;;  %v749_v14 = vmul.f32 %v747_v3, %v727_v59  ;;  %v765_v17 = vstv %s1488_s19  ;;  %v712_v18 = vadd.f32 %v708_v63, %v681_v53 }
 0x31f   :  { %v722_v19 = vadd.f32 %v718_v0, %v691_v56  ;;  %v750_v20 = vmul.f32 %v747_v3, %v728_v60  ;;  %v751_v21 = vmul.f32 %v747_v3, %v729_v1  ;;  %v723_v23 = vadd.f32 %v719_v5, %v692_v57  ;;  %s1492_s21 = spop %1491  ;;  %v821_v5 = vld [vmem:[#allocation4 + $0x188] sm:$0xff] }
 0x320   :  { %v724_v24 = vadd.f32 %v720_v6, %v693_v58  ;;  %v725_v25 = vadd.f32 %v721_v7, %v694_v62  ;;  %v778_v27 = vstv %s1490_s20  ;;  %v740_v28 = vadd.f32 %v736_v10, %v709_v4  ;;  %v822_v6 = vld [vmem:[#allocation4 + $0x190] sm:$0xff]  ;;  %v823_v7 = vld [vmem:[#allocation4 + $0x198] sm:$0xff] }
 0x321   :  { %v741_v29 = vadd.f32 %v737_v11, %v710_v8  ;;  %v752_v30 = vmul.f32 %v747_v3, %v730_v2  ;;  %v767_v32 = vmul.f32 %v765_v17, %v758_v16  ;;  %s1494_s8 = spop %1493  ;;  %v742_v33 = vadd.f32 %v738_v12, %v711_v9 }
 0x322   :  { %v743_v34 = vadd.f32 %v739_v13, %v712_v18  ;;  %v753_v35 = vadd.f32 %v749_v14, %v722_v19  ;;  %v768_v36 = vmul.f32 %v765_v17, %v759_v22  ;;  %v754_v37 = vadd.f32 %v750_v20, %v723_v23  ;;  %v854_v18 = vld [vmem:[#allocation4 + $0x1b8] sm:$0xff] }
 0x323   :  { %v755_v38 = vadd.f32 %v751_v21, %v724_v24  ;;  %v769_v39 = vmul.f32 %v765_v17, %v760_v26  ;;  %v796_v43 = vstv %s1492_s21  ;;  %v770_v44 = vmul.f32 %v765_v17, %v761_v31  ;;  %s1496_s22 = spop %1495  ;;  %v820_v17 = vld [vmem:[#allocation4 + $0x180] sm:$0xff]  ;;  %v853_v24 = vld [vmem:[#allocation4 + $0x1b0] sm:$0xff]  ;;  %s1668_s21 = smov 32  }
 0x324   :  { %v780_v45 = vmul.f32 %v778_v27, %v758_v16  ;;  %v781_v46 = vmul.f32 %v778_v27, %v759_v22  ;;  %v809_v48 = vstv %s1494_s8  ;;  %v756_v49 = vadd.f32 %v752_v30, %v725_v25  ;;  %s1669_s8 = smov 48  }
 0x325   :  { %v771_v50 = vadd.f32 %v767_v32, %v740_v28  ;;  %v782_v52 = vmul.f32 %v778_v27, %v760_v26  ;;  %v783_v53 = vmul.f32 %v778_v27, %v761_v31  ;;  %v772_v54 = vadd.f32 %v768_v36, %v741_v29  ;;  %s1498_s23 = spop %1497  ;;  %v885_v32 = vld [vmem:[#allocation4 + $0x1d8] sm:$0xff] }
 0x326   :  { %v798_v55 = vmul.f32 %v796_v43, %v789_v40  ;;  %v799_v56 = vmul.f32 %v796_v43, %v790_v41  ;;  %v800_v57 = vmul.f32 %v796_v43, %v791_v42  ;;  %v773_v58 = vadd.f32 %v769_v39, %v742_v33 }
 0x327   :  { %v801_v59 = vmul.f32 %v796_v43, %v792_v47  ;;  %v811_v60 = vmul.f32 %v809_v48, %v789_v40  ;;  %v812_v61 = vmul.f32 %v809_v48, %v790_v41  ;;  %v774_v62 = vadd.f32 %v770_v44, %v743_v34  ;;  %s1500_s24 = spop %1499 }
 0x328   :  { %v784_v63 = vadd.f32 %v780_v45, %v753_v35  ;;  %v785_v0 = vadd.f32 %v781_v46, %v754_v37  ;;  %v827_v1 = vstv %s1496_s22  ;;  %v786_v2 = vadd.f32 %v782_v52, %v755_v38  ;;  %v852_v35 = vld [vmem:[#allocation4 + $0x1a8] sm:$0xff]  ;;  %v884_v38 = vld [vmem:[#allocation4 + $0x1d0] sm:$0xff] }
 0x329   :  { %v787_v3 = vadd.f32 %v783_v53, %v756_v49  ;;  %v813_v4 = vmul.f32 %v809_v48, %v791_v42  ;;  %v840_v8 = vstv %s1498_s23  ;;  %v1856_v9 = vadd.f32 %v798_v55, %v771_v50  ;;  %s1502_s25 = spop %1501  ;;  %v916_v49 = vld [vmem:[#allocation4 + $0x1f8] sm:$0xff]  ;;  %v883_v53 = vld [vmem:[#allocation4 + $0x1c8] sm:$0xff] }
 0x32a   :  { %v803_v10 = vadd.f32 %v799_v56, %v772_v54  ;;  %v804_v11 = vadd.f32 %v800_v57, %v773_v58  ;;  %v814_v12 = vmul.f32 %v809_v48, %v792_v47  ;;  %v805_v13 = vadd.f32 %v801_v59, %v774_v62  ;;  %v915_v48 = vld [vmem:[#allocation4 + $0x1f0] sm:$0xff]  ;;  %v914_v62 = vld [vmem:[#allocation4 + $0x1e8] sm:$0xff] }
 0x32b   :  { %v1858_v14 = vadd.f32 %v811_v60, %v784_v63  ;;  %v816_v16 = vadd.f32 %v812_v61, %v785_v0  ;;  %v858_v19 = vstv %s1500_s24  ;;  %s1504_s26 = spop %1503  ;;  %v830_v20 = vmul.f32 %v827_v1, %v821_v5  ;;  %v851_v60 = vld [vmem:[#allocation4 + $0x1a0] sm:$0xff] }
 0x32c   :  { %v831_v21 = vmul.f32 %v827_v1, %v822_v6  ;;  %v832_v22 = vmul.f32 %v827_v1, %v823_v7  ;;  %v843_v23 = vmul.f32 %v840_v8, %v821_v5  ;;  %v817_v25 = vadd.f32 %v813_v4, %v786_v2 }
 0x32d   :  { %s1506_s6 = spop %1505  ;;  %v844_v26 = vmul.f32 %v840_v8, %v822_v6  ;;  %v845_v27 = vmul.f32 %v840_v8, %v823_v7  ;;  %v871_v28 = vstv %s1502_s25  ;;  %v818_v29 = vadd.f32 %v814_v12, %v787_v3  ;;  %v882_v6 = vld [vmem:[#allocation4 + $0x1c0] sm:$0xff] }
 0x32e   :  { %v829_v30 = vmul.f32 %v827_v1, %v820_v17  ;;  %v863_v31 = vmul.f32 %v858_v19, %v854_v18  ;;  %v889_v33 = vstv %s1504_s26  ;;  %v842_v34 = vmul.f32 %v840_v8, %v820_v17 }
 0x32f   :  { %v862_v36 = vmul.f32 %v858_v19, %v853_v24  ;;  %v876_v37 = vmul.f32 %v871_v28, %v854_v18  ;;  %v902_v39 = vstv %s1506_s6  ;;  %s1508_s27 = spop %1507  ;;  %v834_v40 = vadd.f32 %v830_v20, %v803_v10 }
 0x330   :  { %v835_v41 = vadd.f32 %v831_v21, %v804_v11  ;;  %v836_v42 = vadd.f32 %v832_v22, %v805_v13  ;;  %v847_v43 = vadd.f32 %v843_v23, %v816_v16  ;;  %v848_v44 = vadd.f32 %v844_v26, %v817_v25 }
 0x331   :  { %s1510_s28 = spop %1509  ;;  %v849_v45 = vadd.f32 %v845_v27, %v818_v29  ;;  %v875_v46 = vmul.f32 %v871_v28, %v853_v24  ;;  %v894_v47 = vmul.f32 %v889_v33, %v885_v32  ;;  %v861_v50 = vmul.f32 %v858_v19, %v852_v35  ;;  %v913_v27 = vld [vmem:[#allocation4 + $0x1e0] sm:$0xff] }
 0x332   :  { %v867_v52 = vadd.f32 %v863_v31, %v836_v42  ;;  %v893_v54 = vmul.f32 %v889_v33, %v884_v38  ;;  %v907_v55 = vmul.f32 %v902_v39, %v885_v32  ;;  %v866_v56 = vadd.f32 %v862_v36, %v835_v41 }
 0x333   :  { %v880_v57 = vadd.f32 %v876_v37, %v849_v45  ;;  %v920_v58 = vstv %s1508_s27  ;;  %v933_v59 = vstv %s1510_s28  ;;  %v906_v61 = vmul.f32 %v902_v39, %v884_v38 }
 0x334   :  { %v924_v63 = vmul.f32 %v920_v58, %v915_v48  ;;  %v925_v0 = vmul.f32 %v920_v58, %v916_v49  ;;  %v898_v1 = vadd.f32 %v894_v47, %v867_v52  ;;  %v874_v2 = vmul.f32 %v871_v28, %v852_v35  ;;  %v960_v52 = vld [vmem:[%s2167_s9] sm:$0xff] }
 0x335   :  { %v879_v3 = vadd.f32 %v875_v46, %v848_v44  ;;  %v892_v4 = vmul.f32 %v889_v33, %v883_v53  ;;  %v938_v5 = vmul.f32 %v933_v59, %v916_v49  ;;  %v937_v7 = vmul.f32 %v933_v59, %v915_v48  ;;  %v963_v48 = vld [vmem:[%s2167_s9 + $0x18] sm:$0xff]  ;;  %v962_v49 = vld [vmem:[%s2167_s9 + $0x10] sm:$0xff] }
 0x336   :  { %v929_v8 = vadd.f32 %v925_v0, %v898_v1  ;;  %v911_v10 = vadd.f32 %v907_v55, %v880_v57  ;;  %v897_v11 = vadd.f32 %v893_v54, %v866_v56  ;;  %v860_v12 = vmul.f32 %v858_v19, %v851_v60 }
 0x337   :  { %v865_v13 = vadd.f32 %v861_v50, %v834_v40  ;;  %v905_v16 = vmul.f32 %v902_v39, %v883_v53  ;;  %v923_v17 = vmul.f32 %v920_v58, %v914_v62  ;;  %v910_v22 = vadd.f32 %v906_v61, %v879_v3  ;;  %v961_v53 = vld [vmem:[%s2167_s9 + $0x8] sm:$0xff] }
 0x338   :  { %v1860_v18 = vmax.f32 %v929_v8, 0.0  ;;  %v942_v20 = vadd.f32 %v938_v5, %v911_v10  ;;  %v928_v21 = vadd.f32 %v924_v63, %v897_v11  ;;  %v833_v23 = vadd.f32 %v829_v30, %v1856_v9 }
 0x339   :  { %v873_v24 = vmul.f32 %v871_v28, %v851_v60  ;;  %v878_v25 = vadd.f32 %v874_v2, %v847_v43  ;;  %v891_v26 = vmul.f32 %v889_v33, %v882_v6  ;;  %v936_v29 = vmul.f32 %v933_v59, %v914_v62 }
 0x33a   :  { %1010 = vrot.lane.b32.xlu0 %v1860_v18, %s1651_s17  ;;  %v1865_v31 = vmax.f32 %v942_v20, 0.0  ;;  %v941_v19 = vadd.f32 %v937_v7, %v910_v22  ;;  %v896_v32 = vadd.f32 %v892_v4, %v865_v13  ;;  %v846_v35 = vadd.f32 %v842_v34, %v1858_v14 }
 0x33b   :  { %v864_v36 = vadd.f32 %v860_v12, %v833_v23  ;;  %v904_v37 = vmul.f32 %v902_v39, %v882_v6  ;;  %v922_v38 = vmul.f32 %v920_v58, %v913_v27  ;;  %v1870_v9 = vmax.f32 %v928_v21, 0.0 }
 0x33c   :  { %1018 = vrot.lane.b32.xlu1 %v1865_v31, %s1651_s17  ;;  %v927_v28 = vadd.f32 %v923_v17, %v896_v32  ;;  %v909_v30 = vadd.f32 %v905_v16, %v878_v25  ;;  %v877_v33 = vadd.f32 %v873_v24, %v846_v35  ;;  %v935_v40 = vmul.f32 %v933_v59, %v913_v27  ;;  %v967_v35 = vld [vmem:[#allocation6] sm:$0xff] }
 0x33d   :  { %v1874_v41 = vmax.f32 %v941_v19, 0.0  ;;  %v895_v43 = vadd.f32 %v891_v26, %v864_v36  ;;  %v1667_v50 = vmov 0   ;;  %v951_v54 = vlaneseq  ;;  %v968_v36 = vld [vmem:[#allocation6 + $0x8] sm:$0xff] }
 0x33e   :  { %1008 = vrot.lane.b32.xlu0 %v1870_v9, %s1651_s17  ;;  %v940_v42 = vadd.f32 %v936_v29, %v909_v30  ;;  %v1878_v14 = vmax.f32 %v927_v28, 0.0  ;;  %v908_v39 = vadd.f32 %v904_v37, %v877_v33  ;;  %1543 = vset.pattern.permute.xlu1 %v1667_v50  ;;  %v969_v37 = vld [vmem:[#allocation6 + $0x10] sm:$0xff]  ;;  %vm445_vm0 = vcmask 394624  }
 0x33f   :  { %v926_v34 = vadd.f32 %v922_v38, %v895_v43  ;;  %1542 = vset.pattern.permute.xlu0 %v1667_v50  ;;  %v1922_v55 = vand.u32 127, %v951_v54  ;;  %v970_v38 = vld [vmem:[#allocation6 + $0x18] sm:$0xff] }
 0x340   :  { %1016 = vrot.lane.b32.xlu1 %v1874_v41, %s1651_s17  ;;  %v1882_v44 = vmax.f32 %v940_v42, 0.0  ;;  %v939_v45 = vadd.f32 %v935_v40, %v908_v39 }
 0x341   :  { %v1886_v46 = vmax.f32 %v926_v34, 0.0  ;;  %v953_v56 = vadd.s32 128, %v1922_v55  ;;  %vm1020_vm8 = vcmp.lt.s32.totalorder %v1922_v55, 127  ;;  %vm958_vm10 = vcmp.le.s32.totalorder %v1922_v55, 126 }
 0x342   :  { %1006 = vrot.lane.b32.xlu0 %v1878_v14, %s1651_s17  ;;  %v1890_v47 = vmax.f32 %v939_v45, 0.0  ;;  %vm987_vm11 = vcmp.lt.s32.totalorder %v1922_v55, 1  ;;  %vm956_vm13 = vcmp.ge.s32.totalorder %v1922_v55, 1 }
 0x343   :  { %v955_v57 = vand.u32 127, %v953_v56 }
 0x344   :  { %1014 = vrot.lane.b32.xlu1 %v1882_v44, %s1651_s17 }
 0x345   :  { %vm1926_vm9 = vcmp.le.s32.totalorder %v955_v57, 126  ;;  %vm1970_vm12 = vcmp.ge.s32.totalorder %v955_v57, 1 }
 0x346   :  { %1004 = vrot.lane.b32.xlu0 %v1886_v46, %s1651_s17 }
 0x348   :  { %1012 = vrot.lane.b32.xlu1 %v1890_v47, %s1651_s17 }
 0x34a   :  { %977 = vrot.lane.b32.xlu0 %v1860_v18, %s1666_s1 }
 0x34c   :  { %985 = vrot.lane.b32.xlu1 %v1865_v31, %s1666_s1 }
 0x34e   :  { %975 = vrot.lane.b32.xlu0 %v1870_v9, %s1666_s1 }
 0x350   :  { %983 = vrot.lane.b32.xlu1 %v1874_v41, %s1666_s1 }
 0x352   :  { %973 = vrot.lane.b32.xlu0 %v1878_v14, %s1666_s1 }
 0x354   :  { %981 = vrot.lane.b32.xlu1 %v1882_v44, %s1666_s1 }
 0x356   :  { %971 = vrot.lane.b32.xlu0 %v1886_v46, %s1666_s1 }
 0x358   :  { %979 = vrot.lane.b32.xlu1 %v1890_v47, %s1666_s1 }
 0x35a   :  { %1054 = vperm.xlu0 %1542, %v963_v48  }
 0x35c   :  { %1049 = vperm.xlu1 %1543, %v962_v49  }
 0x35e   :  { %1039 = vperm.xlu0 %1542, %v960_v52  }
 0x360   :  { %1044 = vperm.xlu1 %1543, %v961_v53  }
 0x3ac   :  { %v1011_v58 = vpop.permute.xlu0 %1010 }
 0x3ae   :  { %v1019_v60 = vpop.permute.xlu1 %1018 }
 0x3af   :  { %v1024_v61 = vsel %vm1020_vm8, %v1011_v58, %v1019_v60  ;;  %v1028_v62 = vsel %vm1020_vm8, %v1019_v60, %v1011_v58 }
 0x3b0   :  { %1365 = vmatprep.subr.msk.mxu0 %vm1926_vm9, %v1028_v62  ;;  %v1009_v63 = vpop.permute.xlu0 %1008 }
 0x3b1   :  { %1366 = vmatpush1.msk.msra.mxu0 %vm958_vm10, %v1024_v61 }
 0x3b2   :  { %v1017_v0 = vpop.permute.xlu1 %1016 }
 0x3b3   :  { %v1023_v1 = vsel %vm1020_vm8, %v1009_v63, %v1017_v0  ;;  %v1027_v2 = vsel %vm1020_vm8, %v1017_v0, %v1009_v63 }
 0x3b4   :  { %1367 = vmatprep.subr.msk.mxu0 %vm1926_vm9, %v1027_v2  ;;  %v1007_v3 = vpop.permute.xlu0 %1006  ;;  %v964_v2 = vld [vmem:[%s2167_s9 + $0x20] sm:$0xff] }
 0x3b5   :  { %1368 = vmatpush1.msk.msra.mxu0 %vm958_vm10, %v1023_v1 }
 0x3b6   :  { %v1015_v4 = vpop.permute.xlu1 %1014 }
 0x3b7   :  { %v1022_v5 = vsel %vm1020_vm8, %v1007_v3, %v1015_v4  ;;  %v1026_v6 = vsel %vm1020_vm8, %v1015_v4, %v1007_v3  ;;  %v965_v3 = vld [vmem:[%s2167_s9 + $0x28] sm:$0xff]  ;;  %v966_v4 = vld [vmem:[%s2167_s9 + $0x30] sm:$0xff] }
 0x3b8   :  { %1369 = vmatprep.subr.msk.mxu0 %vm1926_vm9, %v1026_v6  ;;  %v1005_v7 = vpop.permute.xlu0 %1004 }
 0x3b9   :  { %1370 = vmatpush1.msk.msra.mxu0 %vm958_vm10, %v1022_v5  ;;  %v1363_v5 = vld [vmem:[%s2162_s4 + $0x20] ss:$0 sm:$0xff] }
 0x3ba   :  { %v1013_v8 = vpop.permute.xlu1 %1012 }
 0x3bb   :  { %v1021_v10 = vsel %vm1020_vm8, %v1005_v7, %v1013_v8  ;;  %v1025_v11 = vsel %vm1020_vm8, %v1013_v8, %v1005_v7 }
 0x3bc   :  { %1371 = vmatprep.subr.msk.mxu0 %vm1926_vm9, %v1025_v11  ;;  %v978_v12 = vpop.permute.xlu0 %977 }
 0x3bd   :  { %1372 = vmatpush1.msk.msra.mxu0 %vm958_vm10, %v1021_v10 }
 0x3be   :  { %v986_v13 = vpop.permute.xlu1 %985  ;;  %1086 = vmatprep.subr.mxu0 %v1865_v31 }
 0x3bf   :  { %1087 = vmatpush1.msra.mxu0 %v1860_v18  ;;  %v991_v18 = vsel %vm987_vm11, %v978_v12, %v986_v13  ;;  %v995_v22 = vsel %vm987_vm11, %v986_v13, %v978_v12 }
 0x3c0   :  { %1088 = vmatprep.subr.mxu0 %v1874_v41  ;;  %v976_v16 = vpop.permute.xlu0 %975 }
 0x3c1   :  { %1089 = vmatpush1.msra.mxu0 %v1870_v9 }
 0x3c2   :  { %v984_v17 = vpop.permute.xlu1 %983  ;;  %1090 = vmatprep.subr.mxu0 %v1882_v44 }
 0x3c3   :  { %1091 = vmatpush1.msra.mxu0 %v1878_v14  ;;  %v990_v24 = vsel %vm987_vm11, %v976_v16, %v984_v17  ;;  %v994_v25 = vsel %vm987_vm11, %v984_v17, %v976_v16 }
 0x3c4   :  { %1092 = vmatprep.subr.mxu0 %v1890_v47  ;;  %v974_v21 = vpop.permute.xlu0 %973 }
 0x3c5   :  { %1093 = vmatpush1.msra.mxu0 %v1886_v46 }
 0x3c6   :  { %v982_v23 = vpop.permute.xlu1 %981  ;;  %1373 = vmatprep.subr.msk.mxu0 %vm1970_vm12, %v991_v18 }
 0x3c7   :  { %1374 = vmatpush1.msk.msra.mxu0 %vm956_vm13, %v995_v22  ;;  %v989_v26 = vsel %vm987_vm11, %v974_v21, %v982_v23  ;;  %v993_v27 = vsel %vm987_vm11, %v982_v23, %v974_v21 }
 0x3c8   :  { %1375 = vmatprep.subr.msk.mxu0 %vm1970_vm12, %v990_v24  ;;  %v972_v29 = vpop.permute.xlu0 %971 }
 0x3c9   :  { %1376 = vmatpush1.msk.msra.mxu0 %vm956_vm13, %v994_v25 }
 0x3ca   :  { %v980_v31 = vpop.permute.xlu1 %979  ;;  %1377 = vmatprep.subr.msk.mxu0 %vm1970_vm12, %v989_v26 }
 0x3cb   :  { %v988_v19 = vsel %vm987_vm11, %v972_v29, %v980_v31  ;;  %v992_v32 = vsel %vm987_vm11, %v980_v31, %v972_v29  ;;  %1378 = vmatpush1.msk.msra.mxu0 %vm956_vm13, %v993_v27 }
 0x3cc   :  { %1379 = vmatprep.subr.msk.mxu0 %vm1970_vm12, %v988_v19 }
 0x3cd   :  { %1380 = vmatpush1.msk.msra.mxu0 %vm956_vm13, %v992_v32 }
 0x3ce   :  { %1381 = vmatmul.mubr.msk.f32.vlgmr.msra.gmra.mxu0 %vm1057_vm14, %v967_v35 }
 0x3cf   :  { %1140 = vmatprep.mubr.f32.mxu0 %v1648_v51 }
 0x3d2   :  { %1382 = vmatmul.mubr.msk.f32.gmra.mxu0 %vm1057_vm14, %v968_v36 }
 0x3d3   :  { %1146 = vmatprep.mubr.f32.mxu0 %v1648_v51 }
 0x3d5   :  { %v1055_v34 = vpop.permute.xlu0 %1054 }
 0x3d6   :  { %1383 = vmatmul.mubr.msk.f32.gmra.mxu0 %vm1057_vm14, %v969_v37 }
 0x3d7   :  { %1152 = vmatprep.mubr.f32.mxu0 %v1648_v51  ;;  %v1050_v41 = vpop.permute.xlu1 %1049 }
 0x3d8   :  { %v427_v9 = vpop.f32.mrf.mxu1 }
 0x3d9   :  { %v1040_v56 = vpop.permute.xlu0 %1039  ;;  %v428_v6 = vadd.f32 %v1363_v5, %v427_v9 }
 0x3da   :  { %1384 = vmatmul.mubr.msk.f32.gmra.mxu0 %vm1057_vm14, %v970_v38  ;;  %v1446_v28 = vpop.f32.mrf.mxu1 }
 0x3db   :  { %v1045_v46 = vpop.permute.xlu1 %1044 }
 0x48e   :  { %v1136_v30 = vpop.f32.mrf.mxu0 }
 0x48f   :  { %v1137_v60 = vadd.f32 %v1136_v30, %v1040_v56 }
 0x490   :  { %v1138_v33 = vpop.f32.mrf.mxu0 }
 0x491   :  { %v1139_v62 = vadd.f32 %v1138_v33, %v1040_v56  ;;  %v2030_v0 = vmax.f32 %v1137_v60, 0.0 }
 0x492   :  { %v1142_v40 = vpop.f32.mrf.mxu0 }
 0x493   :  { %v1143_v52 = vadd.f32 %v1142_v40, %v1045_v46  ;;  %v1160_v1 = vmax.f32 %v1139_v62, 0.0 }
 0x494   :  { %v1144_v42 = vpop.f32.mrf.mxu0 }
 0x495   :  { %v1145_v57 = vadd.f32 %v1144_v42, %v1045_v46  ;;  %v1161_v61 = vmax.f32 %v1143_v52, 0.0  ;;  %v1167_v42 = vld [vmem:[#allocation7] sm:$0xff] }
 0x496   :  { %v1148_v43 = vpop.f32.mrf.mxu0 }
 0x497   :  { %v1149_v14 = vadd.f32 %v1148_v43, %v1050_v41  ;;  %v1162_v63 = vmax.f32 %v1145_v57, 0.0  ;;  %v1168_v43 = vld [vmem:[#allocation7 + $0x8] sm:$0xff] }
 0x498   :  { %v1150_v39 = vpop.f32.mrf.mxu0 }
 0x499   :  { %v2016_v44 = vmax.f32 %v1149_v14, 0.0  ;;  %v1151_v45 = vadd.f32 %v1150_v39, %v1050_v41  ;;  %v1169_v14 = vld [vmem:[#allocation7 + $0x10] sm:$0xff] }
 0x49a   :  { %v1154_v47 = vpop.f32.mrf.mxu0 }
 0x49b   :  { %v2018_v48 = vmax.f32 %v1151_v45, 0.0  ;;  %v1155_v49 = vadd.f32 %v1154_v47, %v1055_v34  ;;  %1206 = vrot.lane.b32.xlu1 %v2016_v44, %s1651_s17 }
 0x49c   :  { %v1156_v50 = vpop.f32.mrf.mxu0 }
 0x49d   :  { %v2022_v53 = vmax.f32 %v1155_v49, 0.0  ;;  %v1157_v54 = vadd.f32 %v1156_v50, %v1055_v34  ;;  %1214 = vrot.lane.b32.xlu0 %v2018_v48, %s1651_s17 }
 0x49f   :  { %v1166_v58 = vmax.f32 %v1157_v54, 0.0  ;;  %1208 = vrot.lane.b32.xlu1 %v2022_v53, %s1651_s17 }
 0x4a1   :  { %1216 = vrot.lane.b32.xlu0 %v1166_v58, %s1651_s17 }
 0x4a3   :  { %1204 = vrot.lane.b32.xlu1 %v1161_v61, %s1651_s17 }
 0x4a5   :  { %1212 = vrot.lane.b32.xlu0 %v1162_v63, %s1651_s17 }
 0x4a7   :  { %1202 = vrot.lane.b32.xlu1 %v2030_v0, %s1651_s17 }
 0x4a9   :  { %1210 = vrot.lane.b32.xlu0 %v1160_v1, %s1651_s17 }
 0x4ab   :  { %1176 = vrot.lane.b32.xlu1 %v2022_v53, %s1666_s1 }
 0x4ad   :  { %1182 = vrot.lane.b32.xlu0 %v2018_v48, %s1666_s1 }
 0x4af   :  { %1174 = vrot.lane.b32.xlu1 %v2016_v44, %s1666_s1 }
 0x4b1   :  { %1184 = vrot.lane.b32.xlu0 %v1166_v58, %s1666_s1 }
 0x4b3   :  { %1172 = vrot.lane.b32.xlu1 %v1161_v61, %s1666_s1 }
 0x4b5   :  { %1180 = vrot.lane.b32.xlu0 %v1162_v63, %s1666_s1 }
 0x4b7   :  { %1170 = vrot.lane.b32.xlu1 %v2030_v0, %s1666_s1 }
 0x4b9   :  { %1178 = vrot.lane.b32.xlu0 %v1160_v1, %s1666_s1 }
 0x4bb   :  { %1236 = vperm.xlu1 %1543, %v964_v2  }
 0x4bd   :  { %1241 = vperm.xlu0 %1542, %v965_v3  }
 0x4bf   :  { %1246 = vperm.xlu1 %1543, %v966_v4  }
 0x4c1   :  { %436 = vrot.lane.b32.xlu0 %v1800_v15, %s1668_s21 }
 0x4c3   :  { %442 = vrot.lane.b32.xlu1 %v428_v6, %s1669_s8 }
 0x50d   :  { %v1207_v7 = vpop.permute.xlu1 %1206 }
 0x50f   :  { %v1215_v8 = vpop.permute.xlu0 %1214 }
 0x510   :  { %v1224_v17 = vsel %vm1020_vm8, %v1215_v8, %v1207_v7  ;;  %v1220_v15 = vsel %vm1020_vm8, %v1207_v7, %v1215_v8 }
 0x511   :  { %v1209_v10 = vpop.permute.xlu1 %1208 }
 0x513   :  { %v1217_v11 = vpop.permute.xlu0 %1216 }
 0x514   :  { %v1221_v12 = vsel %vm1020_vm8, %v1209_v10, %v1217_v11  ;;  %v1225_v13 = vsel %vm1020_vm8, %v1217_v11, %v1209_v10 }
 0x515   :  { %v1205_v16 = vpop.permute.xlu1 %1204  ;;  %1385 = vmatprep.subr.msk.mxu1 %vm1926_vm9, %v1225_v13 }
 0x516   :  { %1386 = vmatpush1.msk.msra.mxu1 %vm958_vm10, %v1221_v12 }
 0x517   :  { %v1213_v21 = vpop.permute.xlu0 %1212  ;;  %1387 = vmatprep.subr.msk.mxu1 %vm1926_vm9, %v1224_v17 }
 0x518   :  { %v1219_v18 = vsel %vm1020_vm8, %v1205_v16, %v1213_v21  ;;  %v1223_v22 = vsel %vm1020_vm8, %v1213_v21, %v1205_v16  ;;  %1388 = vmatpush1.msk.msra.mxu1 %vm958_vm10, %v1220_v15 }
 0x519   :  { %v1203_v23 = vpop.permute.xlu1 %1202  ;;  %1389 = vmatprep.subr.msk.mxu1 %vm1926_vm9, %v1223_v22 }
 0x51a   :  { %1390 = vmatpush1.msk.msra.mxu1 %vm958_vm10, %v1219_v18 }
 0x51b   :  { %v1211_v24 = vpop.permute.xlu0 %1210 }
 0x51c   :  { %v1218_v25 = vsel %vm1020_vm8, %v1203_v23, %v1211_v24  ;;  %v1222_v26 = vsel %vm1020_vm8, %v1211_v24, %v1203_v23 }
 0x51d   :  { %v1177_v27 = vpop.permute.xlu1 %1176  ;;  %1391 = vmatprep.subr.msk.mxu1 %vm1926_vm9, %v1222_v26 }
 0x51e   :  { %1392 = vmatpush1.msk.msra.mxu1 %vm958_vm10, %v1218_v25 }
 0x51f   :  { %v1183_v29 = vpop.permute.xlu0 %1182  ;;  %1274 = vmatprep.subr.mxu1 %v1166_v58 }
 0x520   :  { %1275 = vmatpush1.msra.mxu1 %v2022_v53 }
 0x521   :  { %v1175_v31 = vpop.permute.xlu1 %1174  ;;  %1276 = vmatprep.subr.mxu1 %v2018_v48 }
 0x522   :  { %1277 = vmatpush1.msra.mxu1 %v2016_v44  ;;  %v1188_v37 = vsel %vm987_vm11, %v1175_v31, %v1183_v29  ;;  %v1192_v38 = vsel %vm987_vm11, %v1183_v29, %v1175_v31 }
 0x523   :  { %v1185_v19 = vpop.permute.xlu0 %1184  ;;  %1278 = vmatprep.subr.mxu1 %v1162_v63 }
 0x524   :  { %1279 = vmatpush1.msra.mxu1 %v1161_v61  ;;  %v1189_v59 = vsel %vm987_vm11, %v1177_v27, %v1185_v19  ;;  %v1193_v35 = vsel %vm987_vm11, %v1185_v19, %v1177_v27 }
 0x525   :  { %v1173_v32 = vpop.permute.xlu1 %1172  ;;  %1280 = vmatprep.subr.mxu1 %v1160_v1 }
 0x526   :  { %1281 = vmatpush1.msra.mxu1 %v2030_v0 }
 0x527   :  { %v1181_v36 = vpop.permute.xlu0 %1180  ;;  %1393 = vmatprep.subr.msk.mxu1 %vm1970_vm12, %v1189_v59 }
 0x528   :  { %1394 = vmatpush1.msk.msra.mxu1 %vm956_vm13, %v1193_v35  ;;  %v1187_v9 = vsel %vm987_vm11, %v1173_v32, %v1181_v36  ;;  %v1191_v28 = vsel %vm987_vm11, %v1181_v36, %v1173_v32 }
 0x529   :  { %1395 = vmatprep.subr.msk.mxu1 %vm1970_vm12, %v1188_v37  ;;  %v1171_v30 = vpop.permute.xlu1 %1170 }
 0x52a   :  { %1396 = vmatpush1.msk.msra.mxu1 %vm956_vm13, %v1192_v38 }
 0x52b   :  { %v1179_v33 = vpop.permute.xlu0 %1178  ;;  %1397 = vmatprep.subr.msk.mxu1 %vm1970_vm12, %v1187_v9 }
 0x52c   :  { %v1186_v40 = vsel %vm987_vm11, %v1171_v30, %v1179_v33  ;;  %v1190_v41 = vsel %vm987_vm11, %v1179_v33, %v1171_v30  ;;  %1398 = vmatpush1.msk.msra.mxu1 %vm956_vm13, %v1191_v28 }
 0x52d   :  { %1399 = vmatprep.subr.msk.mxu1 %vm1970_vm12, %v1186_v40 }
 0x52e   :  { %1400 = vmatpush1.msk.msra.mxu1 %vm956_vm13, %v1190_v41 }
 0x52f   :  { %1401 = vmatmul.mubr.msk.f32.vlgmr.msra.gmra.mxu1 %vm1057_vm14, %v1167_v42 }
 0x530   :  { %1328 = vmatprep.mubr.f32.mxu1 %v1648_v51 }
 0x533   :  { %1402 = vmatmul.mubr.msk.f32.gmra.mxu1 %vm1057_vm14, %v1168_v43 }
 0x534   :  { %1334 = vmatprep.mubr.f32.mxu1 %v1648_v51 }
 0x536   :  { %v1237_v34 = vpop.permute.xlu1 %1236 }
 0x537   :  { %1403 = vmatmul.mubr.msk.f32.gmra.mxu1 %vm1057_vm14, %v1169_v14 }
 0x538   :  { %v1242_v39 = vpop.permute.xlu0 %1241 }
 0x53a   :  { %v1247_v44 = vpop.permute.xlu1 %1246 }
 0x53c   :  { %v437_v20 = vpop.permute.xlu0 %436 }
 0x53d   :  { %440 = vst.msk [vmem:[%s2169_s11] sm:$0x3] %vm439_vm15, %v437_v20 }
 0x53e   :  { %v443_v55 = vpop.permute.xlu1 %442 }
 0x53f   :  { %446 = vst.msk [vmem:[%s2169_s11] sm:$0x3] %vm445_vm0, %v443_v55 }
 0x5ef   :  { %v1324_v45 = vpop.f32.mrf.mxu1 }
 0x5f0   :  { %v1325_v51 = vadd.f32 %v1324_v45, %v1237_v34 }
 0x5f1   :  { %v1326_v46 = vpop.f32.mrf.mxu1 }
 0x5f2   :  { %1341 = vst [vmem:[%s2168_s10] sm:$0xff] %v1325_v51  ;;  %v1327_v47 = vadd.f32 %v1326_v46, %v1237_v34 }
 0x5f3   :  { %v1330_v48 = vpop.f32.mrf.mxu1 }
 0x5f4   :  { %1342 = vst [vmem:[%s2168_s10 + $0x8] sm:$0xff] %v1327_v47  ;;  %v1331_v49 = vadd.f32 %v1330_v48, %v1242_v39 }
 0x5f5   :  { %v1332_v50 = vpop.f32.mrf.mxu1 }
 0x5f6   :  { %1343 = vst [vmem:[%s2168_s10 + $0x10] sm:$0xff] %v1331_v49  ;;  %v1333_v52 = vadd.f32 %v1332_v50, %v1242_v39 }
 0x5f7   :  { %v1336_v53 = vpop.f32.mrf.mxu1 }
 0x5f8   :  { %1344 = vst [vmem:[%s2168_s10 + $0x18] sm:$0xff] %v1333_v52  ;;  %v1337_v54 = vadd.f32 %v1336_v53, %v1247_v44 }
 0x5f9   :  { %v1338_v56 = vpop.f32.mrf.mxu1 }
 0x5fa   :  { %1345 = vst [vmem:[%s2168_s10 + $0x20] sm:$0xff] %v1337_v54  ;;  %v1339_v57 = vadd.f32 %v1338_v56, %v1247_v44 }
 0x5fc   :  { %1346 = vst [vmem:[%s2168_s10 + $0x28] sm:$0xff] %v1339_v57 }
 0x5fd   :  { %1355 = vsyncpa [#allocation3], 1 }
 0x5fe   :  { %1356 = vsyncpa [#allocation5], 1 }
 0x5ff   :  { %1357 = vsyncpa [#allocation8], 1 }

</bundles_post_ra>
